<compile_context>
chip_gen: v6e
topology: v6e:2x2x1
jax: 0.10.0
libtpu: 0.0.40
codegen_flags: <defaults>
</compile_context>

<pallas_src>
import functools
import math

import jax
import jax.numpy as jnp
from jax.experimental import pallas as pl
from jax.experimental.pallas import tpu as pltpu

_LN_EPS = 1e-5


def _vmem_limit_bytes():
    # Generation-aware scoped-VMEM limit: half the physical capacity, capped at
    # 96 MiB (v5e/v6e: 128 MiB phys -> 64 MiB; v7x: 64 MiB phys -> 32 MiB).
    try:
        info = pltpu.get_tpu_info()
        phys = int(getattr(info, "vmem_capacity_bytes"))
        return max(32 * 1024 * 1024, min(phys // 2, 96 * 1024 * 1024))
    except Exception:
        return 32 * 1024 * 1024


_VMEM_LIMIT = _vmem_limit_bytes()


# ------------------------- small helpers -------------------------

def _round_up(a, b):
    return (a + b - 1) // b * b


def _pick_tile(dim, preferred, align):
    """Largest multiple of `align` <= `preferred` that divides `dim`, else full dim."""
    if dim <= preferred or dim % align != 0:
        return dim
    t = (preferred // align) * align
    while t >= align:
        if dim % t == 0:
            return t
        t -= align
    return dim


def _choose_tm(M, per_row_bytes, fixed_bytes, limit):
    """Largest 16-aligned row tile dividing M whose VMEM footprint fits `limit`."""
    if M <= 16:
        return M
    cands = [c for c in (512, 256, 128, 64, 32, 16) if c <= M and M % c == 0]
    for c in cands:
        if fixed_bytes + c * per_row_bytes <= limit:
            return c
    # Callers keep M a multiple of 16, so this fallback is only hit for odd/tiny M.
    return cands[-1] if cands else M


def _erf(x):
    # Abramowitz-Stegun 7.1.26 rational approximation (|err| < 1.5e-7): matches
    # open_clip's exact erf-GELU to well below bf16 precision.
    a1, a2, a3, a4, a5 = 0.254829592, -0.284496736, 1.421413741, -1.453152027, 1.061405429
    p = 0.3275911
    ax = jnp.abs(x)
    t = 1.0 / (1.0 + p * ax)
    poly = ((((a5 * t + a4) * t + a3) * t + a2) * t + a1) * t
    y = 1.0 - poly * jnp.exp(-ax * ax)
    return jnp.where(x >= 0.0, y, -y)


def _gelu(x):
    return 0.5 * x * (1.0 + _erf(x * (1.0 / math.sqrt(2.0))))


# ------------------------- fused linear kernel -------------------------
# y = [residual +] act( LN(x) @ W + b )     (LN / act / residual all optional)
#
# Preferred schedule ("weight resident"): whole (K, N) weight as one block,
# grid over M tiles only -> weight DMA'd once, LN computed once per row tile.
# Fallback (weight too large for VMEM): N tiled with M innermost so the (K, tn)
# weight slab stays resident across the M sweep; LN is hoisted by the wrapper.

def _fused_linear_kernel(*refs, activation, has_ln, has_residual):
    it = iter(refs)
    x_ref = next(it)
    if has_ln:
        g_ref = next(it)
        b_ref = next(it)
    w_ref = next(it)
    bias_ref = next(it)
    r_ref = next(it) if has_residual else None
    o_ref = next(it)

    if has_ln:
        x = x_ref[...].astype(jnp.float32)
        mean = jnp.mean(x, axis=-1, keepdims=True)
        var = jnp.mean(jnp.square(x - mean), axis=-1, keepdims=True)
        xn = (x - mean) * jax.lax.rsqrt(var + _LN_EPS)
        xn = xn * g_ref[...].astype(jnp.float32) + b_ref[...].astype(jnp.float32)
        xm = xn.astype(w_ref.dtype)                    # bf16 operand for the MXU
    else:
        xm = x_ref[...].astype(w_ref.dtype)

    y = jnp.dot(xm, w_ref[...], preferred_element_type=jnp.float32)
    y = y + bias_ref[...].astype(jnp.float32)
    if activation == "gelu":
        y = _gelu(y)
    if has_residual:
        y = y + r_ref[...].astype(jnp.float32)
    o_ref[...] = y.astype(o_ref.dtype)


def fused_linear(x, w, bias, *, ln=None, residual=None, activation=None,
                 out_dtype=jnp.bfloat16):
    M, K = x.shape
    Kw, N = w.shape
    assert K == Kw
    has_res = residual is not None

    x_it = x.dtype.itemsize
    o_it = jnp.dtype(out_dtype).itemsize
    r_it = residual.dtype.itemsize if has_res else 0
    w_bytes = K * N * w.dtype.itemsize

    # Whole-weight-resident path if the (double-buffered) weight leaves headroom.
    weight_resident = 2 * w_bytes <= _VMEM_LIMIT - 8 * 1024 * 1024

    if (not weight_resident) and ln is not None:
        # LN cannot be fused without per-N-tile recompute in the tiled schedule:
        # hoist it to a standalone pass instead (review feedback).
        x = layernorm(x, ln[0], ln[1], out_dtype=jnp.bfloat16)
        x_it = x.dtype.itemsize
        ln = None
    has_ln = ln is not None

    kernel = functools.partial(_fused_linear_kernel, activation=activation,
                               has_ln=has_ln, has_residual=has_res)

    if weight_resident:
        per_row = 2 * K * x_it + 2 * N * o_it + 2 * N * r_it
        fixed = 2 * w_bytes + 4 * N * 4 + 4 * K * 4 + (1 << 20)
        tm = _choose_tm(M, per_row, fixed, _VMEM_LIMIT)
        grid = (M // tm,)

        in_specs = [pl.BlockSpec((tm, K), lambda i: (i, 0))]
        args = [x]
        if has_ln:
            g, b = ln
            in_specs += [pl.BlockSpec((1, K), lambda i: (0, 0)),
                         pl.BlockSpec((1, K), lambda i: (0, 0))]
            args += [g.reshape(1, K), b.reshape(1, K)]
        in_specs += [pl.BlockSpec((K, N), lambda i: (0, 0)),   # weight: one block, HBM once
                     pl.BlockSpec((1, N), lambda i: (0, 0))]
        args += [w, bias.reshape(1, N)]
        if has_res:
            in_specs.append(pl.BlockSpec((tm, N), lambda i: (i, 0)))
            args.append(residual)
        out_spec = pl.BlockSpec((tm, N), lambda i: (i, 0))
        semantics = ("parallel",)
        # TODO(synk): on v7x (2 TCs) try pltpu.CORE_PARALLEL here when M//tm >= 2.
        bytes_accessed = (M * K * x_it + w_bytes + N * 4 + M * N * o_it
                          + (M * N * r_it if has_res else 0)
                          + (2 * K * 4 if has_ln else 0))
    else:
        tn = _pick_tile(N, 512, 128)
        per_row = 2 * K * x_it + 2 * tn * o_it + 2 * tn * r_it
        fixed = 2 * K * tn * w.dtype.itemsize + 4 * tn * 4 + (1 << 20)
        tm = _choose_tm(M, per_row, fixed, _VMEM_LIMIT)
        # N outer / M inner so the (K, tn) weight slab stays resident across the M sweep.
        grid = (N // tn, M // tm)
        in_specs = [pl.BlockSpec((tm, K), lambda j, i: (i, 0)),
                    pl.BlockSpec((K, tn), lambda j, i: (0, j)),
                    pl.BlockSpec((1, tn), lambda j, i: (0, j))]
        args = [x, w, bias.reshape(1, N)]
        if has_res:
            in_specs.append(pl.BlockSpec((tm, tn), lambda j, i: (i, j)))
            args.append(residual)
        out_spec = pl.BlockSpec((tm, tn), lambda j, i: (i, j))
        semantics = ("parallel", "parallel")
        bytes_accessed = (M * K * x_it * (N // tn) + w_bytes + N * 4
                          + M * N * o_it + (M * N * r_it if has_res else 0))

    cost = pl.CostEstimate(flops=2 * M * N * K,
                           transcendentals=M * N if activation else 0,
                           bytes_accessed=int(bytes_accessed))

    return pl.pallas_call(
        kernel,
        grid=grid,
        in_specs=in_specs,
        out_specs=out_spec,
        out_shape=jax.ShapeDtypeStruct((M, N), out_dtype),
        compiler_params=pltpu.CompilerParams(
            dimension_semantics=semantics,
            vmem_limit_bytes=_VMEM_LIMIT),
        cost_estimate=cost,
    )(*args)


# ------------------------- standalone layernorm (ln_pre / ln_post) -------------------------

def _layernorm_kernel(x_ref, g_ref, b_ref, o_ref):
    x = x_ref[...].astype(jnp.float32)
    mean = jnp.mean(x, axis=-1, keepdims=True)
    var = jnp.mean(jnp.square(x - mean), axis=-1, keepdims=True)
    xn = (x - mean) * jax.lax.rsqrt(var + _LN_EPS)
    o_ref[...] = (xn * g_ref[...].astype(jnp.float32)
                  + b_ref[...].astype(jnp.float32)).astype(o_ref.dtype)


def layernorm(x, g, b, out_dtype=jnp.bfloat16):
    M, D = x.shape
    tm = _pick_tile(M, 512, 16)     # 16-aligned rows: bf16 packs two rows per sublane
    cost = pl.CostEstimate(
        flops=8 * M * D, transcendentals=M,
        bytes_accessed=x.size * x.dtype.itemsize
        + M * D * jnp.dtype(out_dtype).itemsize + 2 * D * 4)
    return pl.pallas_call(
        _layernorm_kernel,
        grid=(M // tm,),
        in_specs=[pl.BlockSpec((tm, D), lambda i: (i, 0)),
                  pl.BlockSpec((1, D), lambda i: (0, 0)),
                  pl.BlockSpec((1, D), lambda i: (0, 0))],
        out_specs=pl.BlockSpec((tm, D), lambda i: (i, 0)),
        out_shape=jax.ShapeDtypeStruct((M, D), out_dtype),
        compiler_params=pltpu.CompilerParams(
            dimension_semantics=("parallel",),
            vmem_limit_bytes=_VMEM_LIMIT),
        cost_estimate=cost,
    )(x, g.reshape(1, D), b.reshape(1, D))


# ------------------------- multi-head attention kernels -------------------------
# Preferred schedule: grid=(B, head_groups), head group chosen so the per-group
# width (heads_per * dh) is a multiple of 128 lanes.  The Q/K/V column slices
# come straight out of the (S, 3D) QKV slab via BlockSpec index_maps (qkv is
# passed three times with different column-block maps), softmax is f32 per
# head with padded keys masked, and each program stores one lane-dense
# (S, heads_per*dh) block.  Fallback (tiny head dims): whole slab per batch.

def _mha_group_kernel(q_ref, k_ref, v_ref, o_ref, *, heads_per, dh, scale, valid_len):
    S = q_ref.shape[1]
    key_pad = jax.lax.broadcasted_iota(jnp.int32, (1, S), 1) >= valid_len
    outs = []
    for h in range(heads_per):
        q = q_ref[0, :, h * dh:(h + 1) * dh]
        k = k_ref[0, :, h * dh:(h + 1) * dh]
        v = v_ref[0, :, h * dh:(h + 1) * dh]
        s = jnp.einsum("qd,kd->qk", q, k, preferred_element_type=jnp.float32) * scale
        s = jnp.where(key_pad, -1e30, s)               # mask padded key positions
        s = s - jnp.max(s, axis=-1, keepdims=True)
        p = jnp.exp(s)
        p = p * pl.reciprocal(jnp.sum(p, axis=-1, keepdims=True), approx=True)
        outs.append(jnp.einsum("qk,kd->qd", p.astype(v.dtype), v,
                               preferred_element_type=jnp.float32))
    # Single >=128-lane-wide store per program (no full-width deferred concat).
    o_ref[0] = jnp.concatenate(outs, axis=-1).astype(o_ref.dtype)


def _mha_slab_kernel(qkv_ref, o_ref, *, heads, dh, scale, valid_len):
    qkv = qkv_ref[0]                                   # (S, 3*D) bf16
    S = qkv.shape[0]
    D = heads * dh
    key_pad = jax.lax.broadcasted_iota(jnp.int32, (1, S), 1) >= valid_len
    outs = []
    for h in range(heads):
        q = qkv[:, h * dh:(h + 1) * dh]
        k = qkv[:, D + h * dh:D + (h + 1) * dh]
        v = qkv[:, 2 * D + h * dh:2 * D + (h + 1) * dh]
        s = jnp.einsum("qd,kd->qk", q, k, preferred_element_type=jnp.float32) * scale
        s = jnp.where(key_pad, -1e30, s)
        s = s - jnp.max(s, axis=-1, keepdims=True)
        p = jnp.exp(s)
        p = p * pl.reciprocal(jnp.sum(p, axis=-1, keepdims=True), approx=True)
        outs.append(jnp.einsum("qk,kd->qd", p.astype(v.dtype), v,
                               preferred_element_type=jnp.float32))
    o_ref[0] = jnp.concatenate(outs, axis=-1).astype(o_ref.dtype)


def attention(qkv, *, heads, valid_len, out_dtype=jnp.bfloat16):
    B, S, threeD = qkv.shape
    D = threeD // 3
    dh = D // heads
    scale = 1.0 / math.sqrt(dh)
    cost = pl.CostEstimate(
        flops=4 * B * heads * S * S * dh,
        transcendentals=B * heads * S * S,
        bytes_accessed=qkv.size * qkv.dtype.itemsize
        + B * S * D * jnp.dtype(out_dtype).itemsize)

    # Smallest head group whose width is a lane-dense multiple of 128.
    heads_per = 0
    for cand in range(1, heads + 1):
        if heads % cand == 0 and (cand * dh) % 128 == 0:
            heads_per = cand
            break

    if heads_per:
        W = heads_per * dh
        n_groups = heads // heads_per
        # qkv column blocks of width W: Q group g at block g, K at n_groups+g, V at 2*n_groups+g.
        # TODO(synk): pack two heads per PV matmul to fill the 256-wide MXU when dh=64.
        return pl.pallas_call(
            functools.partial(_mha_group_kernel, heads_per=heads_per, dh=dh,
                              scale=scale, valid_len=valid_len),
            grid=(B, n_groups),
            in_specs=[pl.BlockSpec((1, S, W), lambda b, g: (b, 0, g)),
                      pl.BlockSpec((1, S, W), lambda b, g: (b, 0, n_groups + g)),
                      pl.BlockSpec((1, S, W), lambda b, g: (b, 0, 2 * n_groups + g))],
            out_specs=pl.BlockSpec((1, S, W), lambda b, g: (b, 0, g)),
            out_shape=jax.ShapeDtypeStruct((B, S, D), out_dtype),
            compiler_params=pltpu.CompilerParams(
                dimension_semantics=("parallel", "parallel"),
                vmem_limit_bytes=_VMEM_LIMIT),
            cost_estimate=cost,
        )(qkv, qkv, qkv)

    # Fallback for tiny head dims (unit-test sizes): whole slab per batch.
    return pl.pallas_call(
        functools.partial(_mha_slab_kernel, heads=heads, dh=dh,
                          scale=scale, valid_len=valid_len),
        grid=(B,),
        in_specs=[pl.BlockSpec((1, S, threeD), lambda b: (b, 0, 0))],
        out_specs=pl.BlockSpec((1, S, D), lambda b: (b, 0, 0)),
        out_shape=jax.ShapeDtypeStruct((B, S, D), out_dtype),
        compiler_params=pltpu.CompilerParams(
            dimension_semantics=("parallel",),
            vmem_limit_bytes=_VMEM_LIMIT),
        cost_estimate=cost,
    )(qkv)


# ------------------------- ViT forward (glue in JAX) -------------------------

def vit_encode_image(imgs, params, *, patch, heads):
    B, C, H, W = imgs.shape
    G = H // patch
    D = params["class_emb"].shape[0]
    S_valid = G * G + 1
    S = _round_up(S_valid, 16)     # 16-aligned tokens: bf16 packs two rows per sublane

    # patch embedding (conv1, bias=False) as one bf16 im2col pass + Pallas matmul
    # TODO(synk): fold the im2col rearrangement into the linear kernel's BlockSpec
    # index_map to avoid this extra HBM pass over the image batch.
    x = imgs.astype(jnp.bfloat16).reshape(B, C, G, patch, G, patch)
    x = x.transpose(0, 2, 4, 1, 3, 5).reshape(B * G * G, C * patch * patch)
    patches = fused_linear(x, params["patch_w"], params["zero_bias_width"])
    patches = patches.reshape(B, G * G, D)

    # TODO(synk): fuse CLS concat + pos-emb add + zero padding into the ln_pre kernel
    # to drop two extra HBM round trips over the (B, S, D) activation.
    cls = jnp.broadcast_to(params["class_emb"].reshape(1, 1, D), (B, 1, D))
    tok = jnp.concatenate([cls.astype(jnp.bfloat16), patches], axis=1)
    tok = tok + params["pos_emb"].reshape(1, S_valid, D).astype(jnp.bfloat16)
    tok = jnp.pad(tok, ((0, 0), (0, S - S_valid), (0, 0)))          # (B, S, D)

    x = layernorm(tok.reshape(B * S, D), params["ln_pre_g"], params["ln_pre_b"])

    for lp in params["layers"]:
        # attention block: LN1 fused into the QKV projection; residual fused into out-proj
        qkv = fused_linear(x, lp["qkv_w"], lp["qkv_b"],
                           ln=(lp["ln1_g"], lp["ln1_b"]))           # (B*S, 3D)
        a = attention(qkv.reshape(B, S, 3 * D), heads=heads, valid_len=S_valid)
        x = fused_linear(a.reshape(B * S, D), lp["out_w"], lp["out_b"], residual=x)

        # MLP block: LN2 + erf-GELU fused into fc1; residual fused into fc2
        h = fused_linear(x, lp["fc1_w"], lp["fc1_b"],
                         ln=(lp["ln2_g"], lp["ln2_b"]), activation="gelu")
        x = fused_linear(h, lp["fc2_w"], lp["fc2_b"], residual=x)

    pooled = x.reshape(B, S, D)[:, 0, :]                            # CLS-token pool
    pooled = layernorm(pooled, params["ln_post_g"], params["ln_post_b"])
    emb = fused_linear(pooled, params["proj"], params["zero_bias_embed"],
                       out_dtype=jnp.float32)
    return emb                                                      # (B, embed_dim)


# ------------------------- deterministic synthetic params -------------------------

def init_params(key, *, in_ch, patch, width, heads, layers, mlp, embed_dim, seq_len):
    def nrm(k, shape, scale=0.02):
        # weights stored in bf16 (HBM traffic / MXU operands); biases & LN params f32
        return (scale * jax.random.normal(k, shape, jnp.float32)).astype(jnp.bfloat16)

    keys = iter(jax.random.split(key, 8 + 4 * layers))
    params = {
        # NOTE: real OpenCLIP conv1 weights (D, C, P, P) must be permuted to this
        # (C*P*P, D) im2col order before loading.
        "patch_w": nrm(next(keys), (in_ch * patch * patch, width)),
        "class_emb": nrm(next(keys), (width,)),
        "pos_emb": nrm(next(keys), (seq_len, width)),
        "ln_pre_g": jnp.ones((width,), jnp.float32),
        "ln_pre_b": jnp.zeros((width,), jnp.float32),
        "ln_post_g": jnp.ones((width,), jnp.float32),
        "ln_post_b": jnp.zeros((width,), jnp.float32),
        "proj": nrm(next(keys), (width, embed_dim)),
        "zero_bias_width": jnp.zeros((width,), jnp.float32),
        "zero_bias_embed": jnp.zeros((embed_dim,), jnp.float32),
        "layers": [],
    }
    for _ in range(layers):
        lp = {
            "ln1_g": jnp.ones((width,), jnp.float32),
            "ln1_b": jnp.zeros((width,), jnp.float32),
            "qkv_w": nrm(next(keys), (width, 3 * width)),
            "qkv_b": jnp.zeros((3 * width,), jnp.float32),
            "out_w": nrm(next(keys), (width, width)),
            "out_b": jnp.zeros((width,), jnp.float32),
            "ln2_g": jnp.ones((width,), jnp.float32),
            "ln2_b": jnp.zeros((width,), jnp.float32),
            "fc1_w": nrm(next(keys), (width, mlp)),
            "fc1_b": jnp.zeros((mlp,), jnp.float32),
            "fc2_w": nrm(next(keys), (mlp, width)),
            "fc2_b": jnp.zeros((width,), jnp.float32),
        }
        params["layers"].append(lp)
    return params


if __name__ == "__main__":
    # small ViT: 16x16 image, 3 channels, patch 8 -> 4 patches + CLS = 5 tokens (padded to 16)
    B, C, IMG, PATCH = 2, 3, 16, 8
    WIDTH, HEADS, LAYERS, MLP, EMBED = 32, 4, 2, 128, 16
    GRID_SIZE = IMG // PATCH
    SEQ = GRID_SIZE * GRID_SIZE + 1

    key = jax.random.PRNGKey(0)
    kp, kx = jax.random.split(key)
    params = init_params(kp, in_ch=C, patch=PATCH, width=WIDTH, heads=HEADS,
                         layers=LAYERS, mlp=MLP, embed_dim=EMBED, seq_len=SEQ)
    imgs = jax.random.normal(kx, (B, C, IMG, IMG), jnp.float32)

    fwd = jax.jit(functools.partial(vit_encode_image, patch=PATCH, heads=HEADS))
    out = jax.block_until_ready(fwd(imgs, params))
    assert out.shape == (B, EMBED)
    print("KERNEL_OK")
</pallas_src>

<mosaic_0001>
module attributes {stable_mosaic.version = 11 : i64} {
  func.func @_layernorm_kernel(%arg0: i32, %arg1: memref<32x32xbf16, #tpu.memory_space<vmem>>, %arg2: memref<1x32xf32, #tpu.memory_space<vmem>>, %arg3: memref<1x32xf32, #tpu.memory_space<vmem>>, %arg4: memref<32x32xbf16, #tpu.memory_space<vmem>>) attributes {dimension_semantics = [#tpu.dimension_semantics<parallel>], iteration_bounds = array<i64: 1>, scalar_prefetch = 0 : i64, scratch_operands = 0 : i64, tpu.core_type = #tpu.core_type<tc>, window_params = [{transform_indices = @transform_0, window_bounds = array<i64: 32, 32>}, {pipeline_mode = #tpu.pipeline_mode<synchronous>, transform_indices = @transform_1, window_bounds = array<i64: 1, 32>}, {pipeline_mode = #tpu.pipeline_mode<synchronous>, transform_indices = @transform_2, window_bounds = array<i64: 1, 32>}, {transform_indices = @transform_3, window_bounds = array<i64: 32, 32>}]} {
    %c0 = arith.constant 0 : index
    %c0_0 = arith.constant 0 : index
    %0 = vector.load %arg1[%c0, %c0_0] : memref<32x32xbf16, #tpu.memory_space<vmem>>, vector<32x32xbf16>
    %1 = arith.extf %0 : vector<32x32xbf16> to vector<32x32xf32>
    %cst = arith.constant dense<0.000000e+00> : vector<32xf32>
    %2 = vector.multi_reduction <add>, %1, %cst [1] : vector<32x32xf32> to vector<32xf32>
    %3 = vector.shape_cast %2 : vector<32xf32> to vector<32x1xf32>
    %cst_1 = arith.constant 3.200000e+01 : f32
    %4 = vector.broadcast %cst_1 : f32 to vector<32x1xf32>
    %5 = arith.divf %3, %4 : vector<32x1xf32>
    %6 = vector.broadcast %5 : vector<32x1xf32> to vector<32x32xf32>
    %7 = arith.subf %1, %6 : vector<32x32xf32>
    %8 = arith.mulf %7, %7 : vector<32x32xf32>
    %cst_2 = arith.constant dense<0.000000e+00> : vector<32xf32>
    %9 = vector.multi_reduction <add>, %8, %cst_2 [1] : vector<32x32xf32> to vector<32xf32>
    %10 = vector.shape_cast %9 : vector<32xf32> to vector<32x1xf32>
    %cst_3 = arith.constant 3.200000e+01 : f32
    %11 = vector.broadcast %cst_3 : f32 to vector<32x1xf32>
    %12 = arith.divf %10, %11 : vector<32x1xf32>
    %13 = vector.broadcast %5 : vector<32x1xf32> to vector<32x32xf32>
    %14 = arith.subf %1, %13 : vector<32x32xf32>
    %cst_4 = arith.constant 9.99999974E-6 : f32
    %15 = vector.broadcast %cst_4 : f32 to vector<32x1xf32>
    %16 = arith.addf %12, %15 : vector<32x1xf32>
    %17 = math.rsqrt %16 : vector<32x1xf32>
    %18 = vector.broadcast %17 : vector<32x1xf32> to vector<32x32xf32>
    %19 = arith.mulf %14, %18 : vector<32x32xf32>
    %c0_5 = arith.constant 0 : index
    %c0_6 = arith.constant 0 : index
    %20 = vector.load %arg2[%c0_5, %c0_6] : memref<1x32xf32, #tpu.memory_space<vmem>>, vector<1x32xf32>
    %21 = vector.broadcast %20 : vector<1x32xf32> to vector<32x32xf32>
    %22 = arith.mulf %19, %21 : vector<32x32xf32>
    %c0_7 = arith.constant 0 : index
    %c0_8 = arith.constant 0 : index
    %23 = vector.load %arg3[%c0_7, %c0_8] : memref<1x32xf32, #tpu.memory_space<vmem>>, vector<1x32xf32>
    %24 = vector.broadcast %23 : vector<1x32xf32> to vector<32x32xf32>
    %25 = arith.addf %22, %24 : vector<32x32xf32>
    %26 = arith.truncf %25 : vector<32x32xf32> to vector<32x32xbf16>
    %c0_9 = arith.constant 0 : index
    %c0_10 = arith.constant 0 : index
    %27 = vector.load %arg4[%c0_9, %c0_10] : memref<32x32xbf16, #tpu.memory_space<vmem>>, vector<32x32xbf16>
    tpu.vector_store %arg4[%c0_9, %c0_10], %26 {strides = array<i32>} : memref<32x32xbf16, #tpu.memory_space<vmem>>, vector<32x32xbf16>,
    return
  }
  func.func @transform_0(%arg0: i32) -> (i32, i32) {
    %c0_i32 = arith.constant 0 : i32
    %c0_i32_0 = arith.constant 0 : i32
    return %arg0, %c0_i32 : i32, i32
  }
  func.func @transform_1(%arg0: i32) -> (i32, i32) {
    %c0_i32 = arith.constant 0 : i32
    %c0_i32_0 = arith.constant 0 : i32
    %c0_i32_1 = arith.constant 0 : i32
    return %c0_i32, %c0_i32_0 : i32, i32
  }
  func.func @transform_2(%arg0: i32) -> (i32, i32) {
    %c0_i32 = arith.constant 0 : i32
    %c0_i32_0 = arith.constant 0 : i32
    %c0_i32_1 = arith.constant 0 : i32
    return %c0_i32, %c0_i32_0 : i32, i32
  }
  func.func @transform_3(%arg0: i32) -> (i32, i32) {
    %c0_i32 = arith.constant 0 : i32
    %c0_i32_0 = arith.constant 0 : i32
    return %arg0, %c0_i32 : i32, i32
  }
}

module attributes {stable_mosaic.version = 11 : i64} {
  func.func @_fused_linear_kernel(%arg0: i32, %arg1: memref<8x192xbf16, #tpu.memory_space<vmem>>, %arg2: memref<192x32xbf16, #tpu.memory_space<vmem>>, %arg3: memref<1x32xf32, #tpu.memory_space<vmem>>, %arg4: memref<8x32xbf16, #tpu.memory_space<vmem>>) attributes {dimension_semantics = [#tpu.dimension_semantics<parallel>], iteration_bounds = array<i64: 1>, scalar_prefetch = 0 : i64, scratch_operands = 0 : i64, tpu.core_type = #tpu.core_type<tc>, window_params = [{transform_indices = @transform_0, window_bounds = array<i64: 8, 192>}, {pipeline_mode = #tpu.pipeline_mode<synchronous>, transform_indices = @transform_1, window_bounds = array<i64: 192, 32>}, {pipeline_mode = #tpu.pipeline_mode<synchronous>, transform_indices = @transform_2, window_bounds = array<i64: 1, 32>}, {transform_indices = @transform_3, window_bounds = array<i64: 8, 32>}]} {
    %c0 = arith.constant 0 : index
    %c0_0 = arith.constant 0 : index
    %0 = vector.load %arg1[%c0, %c0_0] : memref<8x192xbf16, #tpu.memory_space<vmem>>, vector<8x192xbf16>
    %c0_1 = arith.constant 0 : index
    %c0_2 = arith.constant 0 : index
    %1 = vector.load %arg2[%c0_1, %c0_2] : memref<192x32xbf16, #tpu.memory_space<vmem>>, vector<192x32xbf16>
    %cst = arith.constant dense<0.000000e+00> : vector<8x32xf32>
    %2 = tpu.matmul %0, %1, %cst {dimension_numbers = #tpu.dot_dimension_numbers<[1], [0], [0], [1], [0, 0, 1, 1], [], []>} : vector<8x192xbf16>, vector<192x32xbf16>, vector<8x32xf32> -> vector<8x32xf32>
    %c0_3 = arith.constant 0 : index
    %c0_4 = arith.constant 0 : index
    %3 = vector.load %arg3[%c0_3, %c0_4] : memref<1x32xf32, #tpu.memory_space<vmem>>, vector<1x32xf32>
    %4 = vector.broadcast %3 : vector<1x32xf32> to vector<8x32xf32>
    %5 = arith.addf %2, %4 : vector<8x32xf32>
    %6 = arith.truncf %5 : vector<8x32xf32> to vector<8x32xbf16>
    %c0_5 = arith.constant 0 : index
    %c0_6 = arith.constant 0 : index
    %7 = vector.load %arg4[%c0_5, %c0_6] : memref<8x32xbf16, #tpu.memory_space<vmem>>, vector<8x32xbf16>
    tpu.vector_store %arg4[%c0_5, %c0_6], %6 {strides = array<i32>} : memref<8x32xbf16, #tpu.memory_space<vmem>>, vector<8x32xbf16>,
    return
  }
  func.func @transform_0(%arg0: i32) -> (i32, i32) {
    %c0_i32 = arith.constant 0 : i32
    %c0_i32_0 = arith.constant 0 : i32
    return %arg0, %c0_i32 : i32, i32
  }
  func.func @transform_1(%arg0: i32) -> (i32, i32) {
    %c0_i32 = arith.constant 0 : i32
    %c0_i32_0 = arith.constant 0 : i32
    %c0_i32_1 = arith.constant 0 : i32
    return %c0_i32, %c0_i32_0 : i32, i32
  }
  func.func @transform_2(%arg0: i32) -> (i32, i32) {
    %c0_i32 = arith.constant 0 : i32
    %c0_i32_0 = arith.constant 0 : i32
    %c0_i32_1 = arith.constant 0 : i32
    return %c0_i32, %c0_i32_0 : i32, i32
  }
  func.func @transform_3(%arg0: i32) -> (i32, i32) {
    %c0_i32 = arith.constant 0 : i32
    %c0_i32_0 = arith.constant 0 : i32
    return %arg0, %c0_i32 : i32, i32
  }
}

module attributes {stable_mosaic.version = 11 : i64} {
  func.func @_fused_linear_kernel(%arg0: i32, %arg1: memref<32x32xbf16, #tpu.memory_space<vmem>>, %arg2: memref<1x32xf32, #tpu.memory_space<vmem>>, %arg3: memref<1x32xf32, #tpu.memory_space<vmem>>, %arg4: memref<32x96xbf16, #tpu.memory_space<vmem>>, %arg5: memref<1x96xf32, #tpu.memory_space<vmem>>, %arg6: memref<32x96xbf16, #tpu.memory_space<vmem>>) attributes {dimension_semantics = [#tpu.dimension_semantics<parallel>], iteration_bounds = array<i64: 1>, scalar_prefetch = 0 : i64, scratch_operands = 0 : i64, tpu.core_type = #tpu.core_type<tc>, window_params = [{transform_indices = @transform_0, window_bounds = array<i64: 32, 32>}, {pipeline_mode = #tpu.pipeline_mode<synchronous>, transform_indices = @transform_1, window_bounds = array<i64: 1, 32>}, {pipeline_mode = #tpu.pipeline_mode<synchronous>, transform_indices = @transform_2, window_bounds = array<i64: 1, 32>}, {pipeline_mode = #tpu.pipeline_mode<synchronous>, transform_indices = @transform_3, window_bounds = array<i64: 32, 96>}, {pipeline_mode = #tpu.pipeline_mode<synchronous>, transform_indices = @transform_4, window_bounds = array<i64: 1, 96>}, {transform_indices = @transform_5, window_bounds = array<i64: 32, 96>}]} {
    %c0 = arith.constant 0 : index
    %c0_0 = arith.constant 0 : index
    %0 = vector.load %arg1[%c0, %c0_0] : memref<32x32xbf16, #tpu.memory_space<vmem>>, vector<32x32xbf16>
    %1 = arith.extf %0 : vector<32x32xbf16> to vector<32x32xf32>
    %cst = arith.constant dense<0.000000e+00> : vector<32xf32>
    %2 = vector.multi_reduction <add>, %1, %cst [1] : vector<32x32xf32> to vector<32xf32>
    %3 = vector.shape_cast %2 : vector<32xf32> to vector<32x1xf32>
    %cst_1 = arith.constant 3.200000e+01 : f32
    %4 = vector.broadcast %cst_1 : f32 to vector<32x1xf32>
    %5 = arith.divf %3, %4 : vector<32x1xf32>
    %6 = vector.broadcast %5 : vector<32x1xf32> to vector<32x32xf32>
    %7 = arith.subf %1, %6 : vector<32x32xf32>
    %8 = arith.mulf %7, %7 : vector<32x32xf32>
    %cst_2 = arith.constant dense<0.000000e+00> : vector<32xf32>
    %9 = vector.multi_reduction <add>, %8, %cst_2 [1] : vector<32x32xf32> to vector<32xf32>
    %10 = vector.shape_cast %9 : vector<32xf32> to vector<32x1xf32>
    %cst_3 = arith.constant 3.200000e+01 : f32
    %11 = vector.broadcast %cst_3 : f32 to vector<32x1xf32>
    %12 = arith.divf %10, %11 : vector<32x1xf32>
    %13 = vector.broadcast %5 : vector<32x1xf32> to vector<32x32xf32>
    %14 = arith.subf %1, %13 : vector<32x32xf32>
    %cst_4 = arith.constant 9.99999974E-6 : f32
    %15 = vector.broadcast %cst_4 : f32 to vector<32x1xf32>
    %16 = arith.addf %12, %15 : vector<32x1xf32>
    %17 = math.rsqrt %16 : vector<32x1xf32>
    %18 = vector.broadcast %17 : vector<32x1xf32> to vector<32x32xf32>
    %19 = arith.mulf %14, %18 : vector<32x32xf32>
    %c0_5 = arith.constant 0 : index
    %c0_6 = arith.constant 0 : index
    %20 = vector.load %arg2[%c0_5, %c0_6] : memref<1x32xf32, #tpu.memory_space<vmem>>, vector<1x32xf32>
    %21 = vector.broadcast %20 : vector<1x32xf32> to vector<32x32xf32>
    %22 = arith.mulf %19, %21 : vector<32x32xf32>
    %c0_7 = arith.constant 0 : index
    %c0_8 = arith.constant 0 : index
    %23 = vector.load %arg3[%c0_7, %c0_8] : memref<1x32xf32, #tpu.memory_space<vmem>>, vector<1x32xf32>
    %24 = vector.broadcast %23 : vector<1x32xf32> to vector<32x32xf32>
    %25 = arith.addf %22, %24 : vector<32x32xf32>
    %26 = arith.truncf %25 : vector<32x32xf32> to vector<32x32xbf16>
    %c0_9 = arith.constant 0 : index
    %c0_10 = arith.constant 0 : index
    %27 = vector.load %arg4[%c0_9, %c0_10] : memref<32x96xbf16, #tpu.memory_space<vmem>>, vector<32x96xbf16>
    %cst_11 = arith.constant dense<0.000000e+00> : vector<32x96xf32>
    %28 = tpu.matmul %26, %27, %cst_11 {dimension_numbers = #tpu.dot_dimension_numbers<[1], [0], [0], [1], [0, 0, 1, 1], [], []>} : vector<32x32xbf16>, vector<32x96xbf16>, vector<32x96xf32> -> vector<32x96xf32>
    %c0_12 = arith.constant 0 : index
    %c0_13 = arith.constant 0 : index
    %29 = vector.load %arg5[%c0_12, %c0_13] : memref<1x96xf32, #tpu.memory_space<vmem>>, vector<1x96xf32>
    %30 = vector.broadcast %29 : vector<1x96xf32> to vector<32x96xf32>
    %31 = arith.addf %28, %30 : vector<32x96xf32>
    %32 = arith.truncf %31 : vector<32x96xf32> to vector<32x96xbf16>
    %c0_14 = arith.constant 0 : index
    %c0_15 = arith.constant 0 : index
    %33 = vector.load %arg6[%c0_14, %c0_15] : memref<32x96xbf16, #tpu.memory_space<vmem>>, vector<32x96xbf16>
    tpu.vector_store %arg6[%c0_14, %c0_15], %32 {strides = array<i32>} : memref<32x96xbf16, #tpu.memory_space<vmem>>, vector<32x96xbf16>,
    return
  }
  func.func @transform_0(%arg0: i32) -> (i32, i32) {
    %c0_i32 = arith.constant 0 : i32
    %c0_i32_0 = arith.constant 0 : i32
    return %arg0, %c0_i32 : i32, i32
  }
  func.func @transform_1(%arg0: i32) -> (i32, i32) {
    %c0_i32 = arith.constant 0 : i32
    %c0_i32_0 = arith.constant 0 : i32
    %c0_i32_1 = arith.constant 0 : i32
    return %c0_i32, %c0_i32_0 : i32, i32
  }
  func.func @transform_2(%arg0: i32) -> (i32, i32) {
    %c0_i32 = arith.constant 0 : i32
    %c0_i32_0 = arith.constant 0 : i32
    %c0_i32_1 = arith.constant 0 : i32
    return %c0_i32, %c0_i32_0 : i32, i32
  }
  func.func @transform_3(%arg0: i32) -> (i32, i32) {
    %c0_i32 = arith.constant 0 : i32
    %c0_i32_0 = arith.constant 0 : i32
    %c0_i32_1 = arith.constant 0 : i32
    return %c0_i32, %c0_i32_0 : i32, i32
  }
  func.func @transform_4(%arg0: i32) -> (i32, i32) {
    %c0_i32 = arith.constant 0 : i32
    %c0_i32_0 = arith.constant 0 : i32
    %c0_i32_1 = arith.constant 0 : i32
    return %c0_i32, %c0_i32_0 : i32, i32
  }
  func.func @transform_5(%arg0: i32) -> (i32, i32) {
    %c0_i32 = arith.constant 0 : i32
    %c0_i32_0 = arith.constant 0 : i32
    return %arg0, %c0_i32 : i32, i32
  }
}

module attributes {stable_mosaic.version = 11 : i64} {
  func.func @_mha_slab_kernel(%arg0: i32, %arg1: memref<1x16x96xbf16, #tpu.memory_space<vmem>>, %arg2: memref<1x16x32xbf16, #tpu.memory_space<vmem>>) attributes {dimension_semantics = [#tpu.dimension_semantics<parallel>], iteration_bounds = array<i64: 2>, scalar_prefetch = 0 : i64, scratch_operands = 0 : i64, tpu.core_type = #tpu.core_type<tc>, window_params = [{transform_indices = @transform_0, window_bounds = array<i64: 1, 16, 96>}, {transform_indices = @transform_1, window_bounds = array<i64: 1, 16, 32>}]} {
    %c0 = arith.constant 0 : index
    %c0_0 = arith.constant 0 : index
    %c0_1 = arith.constant 0 : index
    %0 = vector.load %arg1[%c0, %c0_0, %c0_1] : memref<1x16x96xbf16, #tpu.memory_space<vmem>>, vector<1x16x96xbf16>
    %1 = vector.shape_cast %0 : vector<1x16x96xbf16> to vector<16x96xbf16>
    %2 = tpu.iota {dimensions = array<i32: 1>} : vector<1x16xi32>
    %c5_i32 = arith.constant 5 : i32
    %3 = vector.broadcast %c5_i32 : i32 to vector<1x16xi32>
    %4 = arith.cmpi sge, %2, %3 : vector<1x16xi32>
    %5 = vector.extract_strided_slice %1 {offsets = [0, 0], sizes = [16, 8], strides = [1, 1]} : vector<16x96xbf16> to vector<16x8xbf16>
    %6 = vector.extract_strided_slice %1 {offsets = [0, 32], sizes = [16, 8], strides = [1, 1]} : vector<16x96xbf16> to vector<16x8xbf16>
    %7 = vector.extract_strided_slice %1 {offsets = [0, 64], sizes = [16, 8], strides = [1, 1]} : vector<16x96xbf16> to vector<16x8xbf16>
    "tpu.trace_start"() <{level = 10 : i32, message = "qd,kd->qk"}> : () -> ()
    %cst = arith.constant dense<0.000000e+00> : vector<16x16xf32>
    %8 = tpu.matmul %5, %6, %cst {dimension_numbers = #tpu.dot_dimension_numbers<[1], [1], [0], [0], [0, 0, 1, 0], [], []>} : vector<16x8xbf16>, vector<16x8xbf16>, vector<16x16xf32> -> vector<16x16xf32>
    "tpu.trace_stop"() : () -> ()
    %cst_2 = arith.constant 0.353553385 : f32
    %9 = vector.broadcast %cst_2 : f32 to vector<16x16xf32>
    %10 = arith.mulf %8, %9 : vector<16x16xf32>
    %cst_3 = arith.constant -1.000000e+30 : f32
    %11 = vector.shape_cast %4 : vector<1x16xi1> to vector<1x16xi1>
    %12 = vector.broadcast %11 : vector<1x16xi1> to vector<16x16xi1>
    %13 = vector.broadcast %cst_3 : f32 to vector<16x16xf32>
    %14 = arith.select %12, %13, %10 : vector<16x16xi1>, vector<16x16xf32>
    %cst_4 = arith.constant dense<0xFF800000> : vector<16xf32>
    %15 = vector.multi_reduction <maximumf>, %14, %cst_4 [1] : vector<16x16xf32> to vector<16xf32>
    %16 = vector.shape_cast %15 : vector<16xf32> to vector<16x1xf32>
    %17 = vector.broadcast %16 : vector<16x1xf32> to vector<16x16xf32>
    %18 = arith.subf %14, %17 : vector<16x16xf32>
    %19 = math.exp %18 : vector<16x16xf32>
    %cst_5 = arith.constant dense<0.000000e+00> : vector<16xf32>
    %20 = vector.multi_reduction <add>, %19, %cst_5 [1] : vector<16x16xf32> to vector<16xf32>
    %21 = vector.shape_cast %20 : vector<16xf32> to vector<16x1xf32>
    %22 = tpu.reciprocal %21 {approx = true} : vector<16x1xf32> -> vector<16x1xf32>
    %23 = vector.broadcast %22 : vector<16x1xf32> to vector<16x16xf32>
    %24 = arith.mulf %19, %23 : vector<16x16xf32>
    %25 = arith.truncf %24 : vector<16x16xf32> to vector<16x16xbf16>
    "tpu.trace_start"() <{level = 10 : i32, message = "qk,kd->qd"}> : () -> ()
    %cst_6 = arith.constant dense<0.000000e+00> : vector<16x8xf32>
    %26 = tpu.matmul %25, %7, %cst_6 {dimension_numbers = #tpu.dot_dimension_numbers<[1], [0], [0], [1], [0, 0, 1, 1], [], []>} : vector<16x16xbf16>, vector<16x8xbf16>, vector<16x8xf32> -> vector<16x8xf32>
    "tpu.trace_stop"() : () -> ()
    %27 = vector.extract_strided_slice %1 {offsets = [0, 8], sizes = [16, 8], strides = [1, 1]} : vector<16x96xbf16> to vector<16x8xbf16>
    %28 = vector.extract_strided_slice %1 {offsets = [0, 40], sizes = [16, 8], strides = [1, 1]} : vector<16x96xbf16> to vector<16x8xbf16>
    %29 = vector.extract_strided_slice %1 {offsets = [0, 72], sizes = [16, 8], strides = [1, 1]} : vector<16x96xbf16> to vector<16x8xbf16>
    "tpu.trace_start"() <{level = 10 : i32, message = "qd,kd->qk"}> : () -> ()
    %cst_7 = arith.constant dense<0.000000e+00> : vector<16x16xf32>
    %30 = tpu.matmul %27, %28, %cst_7 {dimension_numbers = #tpu.dot_dimension_numbers<[1], [1], [0], [0], [0, 0, 1, 0], [], []>} : vector<16x8xbf16>, vector<16x8xbf16>, vector<16x16xf32> -> vector<16x16xf32>
    "tpu.trace_stop"() : () -> ()
    %cst_8 = arith.constant 0.353553385 : f32
    %31 = vector.broadcast %cst_8 : f32 to vector<16x16xf32>
    %32 = arith.mulf %30, %31 : vector<16x16xf32>
    %cst_9 = arith.constant -1.000000e+30 : f32
    %33 = vector.shape_cast %4 : vector<1x16xi1> to vector<1x16xi1>
    %34 = vector.broadcast %33 : vector<1x16xi1> to vector<16x16xi1>
    %35 = vector.broadcast %cst_9 : f32 to vector<16x16xf32>
    %36 = arith.select %34, %35, %32 : vector<16x16xi1>, vector<16x16xf32>
    %cst_10 = arith.constant dense<0xFF800000> : vector<16xf32>
    %37 = vector.multi_reduction <maximumf>, %36, %cst_10 [1] : vector<16x16xf32> to vector<16xf32>
    %38 = vector.shape_cast %37 : vector<16xf32> to vector<16x1xf32>
    %39 = vector.broadcast %38 : vector<16x1xf32> to vector<16x16xf32>
    %40 = arith.subf %36, %39 : vector<16x16xf32>
    %41 = math.exp %40 : vector<16x16xf32>
    %cst_11 = arith.constant dense<0.000000e+00> : vector<16xf32>
    %42 = vector.multi_reduction <add>, %41, %cst_11 [1] : vector<16x16xf32> to vector<16xf32>
    %43 = vector.shape_cast %42 : vector<16xf32> to vector<16x1xf32>
    %44 = tpu.reciprocal %43 {approx = true} : vector<16x1xf32> -> vector<16x1xf32>
    %45 = vector.broadcast %44 : vector<16x1xf32> to vector<16x16xf32>
    %46 = arith.mulf %41, %45 : vector<16x16xf32>
    %47 = arith.truncf %46 : vector<16x16xf32> to vector<16x16xbf16>
    "tpu.trace_start"() <{level = 10 : i32, message = "qk,kd->qd"}> : () -> ()
    %cst_12 = arith.constant dense<0.000000e+00> : vector<16x8xf32>
    %48 = tpu.matmul %47, %29, %cst_12 {dimension_numbers = #tpu.dot_dimension_numbers<[1], [0], [0], [1], [0, 0, 1, 1], [], []>} : vector<16x16xbf16>, vector<16x8xbf16>, vector<16x8xf32> -> vector<16x8xf32>
    "tpu.trace_stop"() : () -> ()
    %49 = vector.extract_strided_slice %1 {offsets = [0, 16], sizes = [16, 8], strides = [1, 1]} : vector<16x96xbf16> to vector<16x8xbf16>
    %50 = vector.extract_strided_slice %1 {offsets = [0, 48], sizes = [16, 8], strides = [1, 1]} : vector<16x96xbf16> to vector<16x8xbf16>
    %51 = vector.extract_strided_slice %1 {offsets = [0, 80], sizes = [16, 8], strides = [1, 1]} : vector<16x96xbf16> to vector<16x8xbf16>
    "tpu.trace_start"() <{level = 10 : i32, message = "qd,kd->qk"}> : () -> ()
    %cst_13 = arith.constant dense<0.000000e+00> : vector<16x16xf32>
    %52 = tpu.matmul %49, %50, %cst_13 {dimension_numbers = #tpu.dot_dimension_numbers<[1], [1], [0], [0], [0, 0, 1, 0], [], []>} : vector<16x8xbf16>, vector<16x8xbf16>, vector<16x16xf32> -> vector<16x16xf32>
    "tpu.trace_stop"() : () -> ()
    %cst_14 = arith.constant 0.353553385 : f32
    %53 = vector.broadcast %cst_14 : f32 to vector<16x16xf32>
    %54 = arith.mulf %52, %53 : vector<16x16xf32>
    %cst_15 = arith.constant -1.000000e+30 : f32
    %55 = vector.shape_cast %4 : vector<1x16xi1> to vector<1x16xi1>
    %56 = vector.broadcast %55 : vector<1x16xi1> to vector<16x16xi1>
    %57 = vector.broadcast %cst_15 : f32 to vector<16x16xf32>
    %58 = arith.select %56, %57, %54 : vector<16x16xi1>, vector<16x16xf32>
    %cst_16 = arith.constant dense<0xFF800000> : vector<16xf32>
    %59 = vector.multi_reduction <maximumf>, %58, %cst_16 [1] : vector<16x16xf32> to vector<16xf32>
    %60 = vector.shape_cast %59 : vector<16xf32> to vector<16x1xf32>
    %61 = vector.broadcast %60 : vector<16x1xf32> to vector<16x16xf32>
    %62 = arith.subf %58, %61 : vector<16x16xf32>
    %63 = math.exp %62 : vector<16x16xf32>
    %cst_17 = arith.constant dense<0.000000e+00> : vector<16xf32>
    %64 = vector.multi_reduction <add>, %63, %cst_17 [1] : vector<16x16xf32> to vector<16xf32>
    %65 = vector.shape_cast %64 : vector<16xf32> to vector<16x1xf32>
    %66 = tpu.reciprocal %65 {approx = true} : vector<16x1xf32> -> vector<16x1xf32>
    %67 = vector.broadcast %66 : vector<16x1xf32> to vector<16x16xf32>
    %68 = arith.mulf %63, %67 : vector<16x16xf32>
    %69 = arith.truncf %68 : vector<16x16xf32> to vector<16x16xbf16>
    "tpu.trace_start"() <{level = 10 : i32, message = "qk,kd->qd"}> : () -> ()
    %cst_18 = arith.constant dense<0.000000e+00> : vector<16x8xf32>
    %70 = tpu.matmul %69, %51, %cst_18 {dimension_numbers = #tpu.dot_dimension_numbers<[1], [0], [0], [1], [0, 0, 1, 1], [], []>} : vector<16x16xbf16>, vector<16x8xbf16>, vector<16x8xf32> -> vector<16x8xf32>
    "tpu.trace_stop"() : () -> ()
    %71 = vector.extract_strided_slice %1 {offsets = [0, 24], sizes = [16, 8], strides = [1, 1]} : vector<16x96xbf16> to vector<16x8xbf16>
    %72 = vector.extract_strided_slice %1 {offsets = [0, 56], sizes = [16, 8], strides = [1, 1]} : vector<16x96xbf16> to vector<16x8xbf16>
    %73 = vector.extract_strided_slice %1 {offsets = [0, 88], sizes = [16, 8], strides = [1, 1]} : vector<16x96xbf16> to vector<16x8xbf16>
    "tpu.trace_start"() <{level = 10 : i32, message = "qd,kd->qk"}> : () -> ()
    %cst_19 = arith.constant dense<0.000000e+00> : vector<16x16xf32>
    %74 = tpu.matmul %71, %72, %cst_19 {dimension_numbers = #tpu.dot_dimension_numbers<[1], [1], [0], [0], [0, 0, 1, 0], [], []>} : vector<16x8xbf16>, vector<16x8xbf16>, vector<16x16xf32> -> vector<16x16xf32>
    "tpu.trace_stop"() : () -> ()
    %cst_20 = arith.constant 0.353553385 : f32
    %75 = vector.broadcast %cst_20 : f32 to vector<16x16xf32>
    %76 = arith.mulf %74, %75 : vector<16x16xf32>
    %cst_21 = arith.constant -1.000000e+30 : f32
    %77 = vector.shape_cast %4 : vector<1x16xi1> to vector<1x16xi1>
    %78 = vector.broadcast %77 : vector<1x16xi1> to vector<16x16xi1>
    %79 = vector.broadcast %cst_21 : f32 to vector<16x16xf32>
    %80 = arith.select %78, %79, %76 : vector<16x16xi1>, vector<16x16xf32>
    %cst_22 = arith.constant dense<0xFF800000> : vector<16xf32>
    %81 = vector.multi_reduction <maximumf>, %80, %cst_22 [1] : vector<16x16xf32> to vector<16xf32>
    %82 = vector.shape_cast %81 : vector<16xf32> to vector<16x1xf32>
    %83 = vector.broadcast %82 : vector<16x1xf32> to vector<16x16xf32>
    %84 = arith.subf %80, %83 : vector<16x16xf32>
    %85 = math.exp %84 : vector<16x16xf32>
    %cst_23 = arith.constant dense<0.000000e+00> : vector<16xf32>
    %86 = vector.multi_reduction <add>, %85, %cst_23 [1] : vector<16x16xf32> to vector<16xf32>
    %87 = vector.shape_cast %86 : vector<16xf32> to vector<16x1xf32>
    %88 = tpu.reciprocal %87 {approx = true} : vector<16x1xf32> -> vector<16x1xf32>
    %89 = vector.broadcast %88 : vector<16x1xf32> to vector<16x16xf32>
    %90 = arith.mulf %85, %89 : vector<16x16xf32>
    %91 = arith.truncf %90 : vector<16x16xf32> to vector<16x16xbf16>
    "tpu.trace_start"() <{level = 10 : i32, message = "qk,kd->qd"}> : () -> ()
    %cst_24 = arith.constant dense<0.000000e+00> : vector<16x8xf32>
    %92 = tpu.matmul %91, %73, %cst_24 {dimension_numbers = #tpu.dot_dimension_numbers<[1], [0], [0], [1], [0, 0, 1, 1], [], []>} : vector<16x16xbf16>, vector<16x8xbf16>, vector<16x8xf32> -> vector<16x8xf32>
    "tpu.trace_stop"() : () -> ()
    %93 = tpu.concatenate %26, %48, %70, %92 in 1 : vector<16x8xf32>, vector<16x8xf32>, vector<16x8xf32>, vector<16x8xf32> -> vector<16x32xf32>
    %94 = arith.truncf %93 : vector<16x32xf32> to vector<16x32xbf16>
    %c0_25 = arith.constant 0 : index
    %c0_26 = arith.constant 0 : index
    %c0_27 = arith.constant 0 : index
    %95 = vector.load %arg2[%c0_25, %c0_26, %c0_27] : memref<1x16x32xbf16, #tpu.memory_space<vmem>>, vector<1x16x32xbf16>
    %96 = vector.shape_cast %95 : vector<1x16x32xbf16> to vector<16x32xbf16>
    %97 = vector.shape_cast %94 : vector<16x32xbf16> to vector<1x16x32xbf16>
    tpu.vector_store %arg2[%c0_25, %c0_26, %c0_27], %97 {strides = array<i32>} : memref<1x16x32xbf16, #tpu.memory_space<vmem>>, vector<1x16x32xbf16>,
    return
  }
  func.func @transform_0(%arg0: i32) -> (i32, i32, i32) {
    %c0_i32 = arith.constant 0 : i32
    %c0_i32_0 = arith.constant 0 : i32
    %c0_i32_1 = arith.constant 0 : i32
    return %arg0, %c0_i32, %c0_i32_0 : i32, i32, i32
  }
  func.func @transform_1(%arg0: i32) -> (i32, i32, i32) {
    %c0_i32 = arith.constant 0 : i32
    %c0_i32_0 = arith.constant 0 : i32
    %c0_i32_1 = arith.constant 0 : i32
    return %arg0, %c0_i32, %c0_i32_0 : i32, i32, i32
  }
}

module attributes {stable_mosaic.version = 11 : i64} {
  func.func @_fused_linear_kernel(%arg0: i32, %arg1: memref<32x32xbf16, #tpu.memory_space<vmem>>, %arg2: memref<32x32xbf16, #tpu.memory_space<vmem>>, %arg3: memref<1x32xf32, #tpu.memory_space<vmem>>, %arg4: memref<32x32xbf16, #tpu.memory_space<vmem>>, %arg5: memref<32x32xbf16, #tpu.memory_space<vmem>>) attributes {dimension_semantics = [#tpu.dimension_semantics<parallel>], iteration_bounds = array<i64: 1>, scalar_prefetch = 0 : i64, scratch_operands = 0 : i64, tpu.core_type = #tpu.core_type<tc>, window_params = [{transform_indices = @transform_0, window_bounds = array<i64: 32, 32>}, {pipeline_mode = #tpu.pipeline_mode<synchronous>, transform_indices = @transform_1, window_bounds = array<i64: 32, 32>}, {pipeline_mode = #tpu.pipeline_mode<synchronous>, transform_indices = @transform_2, window_bounds = array<i64: 1, 32>}, {transform_indices = @transform_3, window_bounds = array<i64: 32, 32>}, {transform_indices = @transform_4, window_bounds = array<i64: 32, 32>}]} {
    %c0 = arith.constant 0 : index
    %c0_0 = arith.constant 0 : index
    %0 = vector.load %arg1[%c0, %c0_0] : memref<32x32xbf16, #tpu.memory_space<vmem>>, vector<32x32xbf16>
    %c0_1 = arith.constant 0 : index
    %c0_2 = arith.constant 0 : index
    %1 = vector.load %arg2[%c0_1, %c0_2] : memref<32x32xbf16, #tpu.memory_space<vmem>>, vector<32x32xbf16>
    %cst = arith.constant dense<0.000000e+00> : vector<32x32xf32>
    %2 = tpu.matmul %0, %1, %cst {dimension_numbers = #tpu.dot_dimension_numbers<[1], [0], [0], [1], [0, 0, 1, 1], [], []>} : vector<32x32xbf16>, vector<32x32xbf16>, vector<32x32xf32> -> vector<32x32xf32>
    %c0_3 = arith.constant 0 : index
    %c0_4 = arith.constant 0 : index
    %3 = vector.load %arg3[%c0_3, %c0_4] : memref<1x32xf32, #tpu.memory_space<vmem>>, vector<1x32xf32>
    %4 = vector.broadcast %3 : vector<1x32xf32> to vector<32x32xf32>
    %5 = arith.addf %2, %4 : vector<32x32xf32>
    %c0_5 = arith.constant 0 : index
    %c0_6 = arith.constant 0 : index
    %6 = vector.load %arg4[%c0_5, %c0_6] : memref<32x32xbf16, #tpu.memory_space<vmem>>, vector<32x32xbf16>
    %7 = arith.extf %6 : vector<32x32xbf16> to vector<32x32xf32>
    %8 = arith.addf %5, %7 : vector<32x32xf32>
    %9 = arith.truncf %8 : vector<32x32xf32> to vector<32x32xbf16>
    %c0_7 = arith.constant 0 : index
    %c0_8 = arith.constant 0 : index
    %10 = vector.load %arg5[%c0_7, %c0_8] : memref<32x32xbf16, #tpu.memory_space<vmem>>, vector<32x32xbf16>
    tpu.vector_store %arg5[%c0_7, %c0_8], %9 {strides = array<i32>} : memref<32x32xbf16, #tpu.memory_space<vmem>>, vector<32x32xbf16>,
    return
  }
  func.func @transform_0(%arg0: i32) -> (i32, i32) {
    %c0_i32 = arith.constant 0 : i32
    %c0_i32_0 = arith.constant 0 : i32
    return %arg0, %c0_i32 : i32, i32
  }
  func.func @transform_1(%arg0: i32) -> (i32, i32) {
    %c0_i32 = arith.constant 0 : i32
    %c0_i32_0 = arith.constant 0 : i32
    %c0_i32_1 = arith.constant 0 : i32
    return %c0_i32, %c0_i32_0 : i32, i32
  }
  func.func @transform_2(%arg0: i32) -> (i32, i32) {
    %c0_i32 = arith.constant 0 : i32
    %c0_i32_0 = arith.constant 0 : i32
    %c0_i32_1 = arith.constant 0 : i32
    return %c0_i32, %c0_i32_0 : i32, i32
  }
  func.func @transform_3(%arg0: i32) -> (i32, i32) {
    %c0_i32 = arith.constant 0 : i32
    %c0_i32_0 = arith.constant 0 : i32
    return %arg0, %c0_i32 : i32, i32
  }
  func.func @transform_4(%arg0: i32) -> (i32, i32) {
    %c0_i32 = arith.constant 0 : i32
    %c0_i32_0 = arith.constant 0 : i32
    return %arg0, %c0_i32 : i32, i32
  }
}

module attributes {stable_mosaic.version = 11 : i64} {
  func.func @_fused_linear_kernel(%arg0: i32, %arg1: memref<32x128xbf16, #tpu.memory_space<vmem>>, %arg2: memref<128x32xbf16, #tpu.memory_space<vmem>>, %arg3: memref<1x32xf32, #tpu.memory_space<vmem>>, %arg4: memref<32x32xbf16, #tpu.memory_space<vmem>>, %arg5: memref<32x32xbf16, #tpu.memory_space<vmem>>) attributes {dimension_semantics = [#tpu.dimension_semantics<parallel>], iteration_bounds = array<i64: 1>, scalar_prefetch = 0 : i64, scratch_operands = 0 : i64, tpu.core_type = #tpu.core_type<tc>, window_params = [{transform_indices = @transform_0, window_bounds = array<i64: 32, 128>}, {pipeline_mode = #tpu.pipeline_mode<synchronous>, transform_indices = @transform_1, window_bounds = array<i64: 128, 32>}, {pipeline_mode = #tpu.pipeline_mode<synchronous>, transform_indices = @transform_2, window_bounds = array<i64: 1, 32>}, {transform_indices = @transform_3, window_bounds = array<i64: 32, 32>}, {transform_indices = @transform_4, window_bounds = array<i64: 32, 32>}]} {
    %c0 = arith.constant 0 : index
    %c0_0 = arith.constant 0 : index
    %0 = vector.load %arg1[%c0, %c0_0] : memref<32x128xbf16, #tpu.memory_space<vmem>>, vector<32x128xbf16>
    %c0_1 = arith.constant 0 : index
    %c0_2 = arith.constant 0 : index
    %1 = vector.load %arg2[%c0_1, %c0_2] : memref<128x32xbf16, #tpu.memory_space<vmem>>, vector<128x32xbf16>
    %cst = arith.constant dense<0.000000e+00> : vector<32x32xf32>
    %2 = tpu.matmul %0, %1, %cst {dimension_numbers = #tpu.dot_dimension_numbers<[1], [0], [0], [1], [0, 0, 1, 1], [], []>} : vector<32x128xbf16>, vector<128x32xbf16>, vector<32x32xf32> -> vector<32x32xf32>
    %c0_3 = arith.constant 0 : index
    %c0_4 = arith.constant 0 : index
    %3 = vector.load %arg3[%c0_3, %c0_4] : memref<1x32xf32, #tpu.memory_space<vmem>>, vector<1x32xf32>
    %4 = vector.broadcast %3 : vector<1x32xf32> to vector<32x32xf32>
    %5 = arith.addf %2, %4 : vector<32x32xf32>
    %c0_5 = arith.constant 0 : index
    %c0_6 = arith.constant 0 : index
    %6 = vector.load %arg4[%c0_5, %c0_6] : memref<32x32xbf16, #tpu.memory_space<vmem>>, vector<32x32xbf16>
    %7 = arith.extf %6 : vector<32x32xbf16> to vector<32x32xf32>
    %8 = arith.addf %5, %7 : vector<32x32xf32>
    %9 = arith.truncf %8 : vector<32x32xf32> to vector<32x32xbf16>
    %c0_7 = arith.constant 0 : index
    %c0_8 = arith.constant 0 : index
    %10 = vector.load %arg5[%c0_7, %c0_8] : memref<32x32xbf16, #tpu.memory_space<vmem>>, vector<32x32xbf16>
    tpu.vector_store %arg5[%c0_7, %c0_8], %9 {strides = array<i32>} : memref<32x32xbf16, #tpu.memory_space<vmem>>, vector<32x32xbf16>,
    return
  }
  func.func @transform_0(%arg0: i32) -> (i32, i32) {
    %c0_i32 = arith.constant 0 : i32
    %c0_i32_0 = arith.constant 0 : i32
    return %arg0, %c0_i32 : i32, i32
  }
  func.func @transform_1(%arg0: i32) -> (i32, i32) {
    %c0_i32 = arith.constant 0 : i32
    %c0_i32_0 = arith.constant 0 : i32
    %c0_i32_1 = arith.constant 0 : i32
    return %c0_i32, %c0_i32_0 : i32, i32
  }
  func.func @transform_2(%arg0: i32) -> (i32, i32) {
    %c0_i32 = arith.constant 0 : i32
    %c0_i32_0 = arith.constant 0 : i32
    %c0_i32_1 = arith.constant 0 : i32
    return %c0_i32, %c0_i32_0 : i32, i32
  }
  func.func @transform_3(%arg0: i32) -> (i32, i32) {
    %c0_i32 = arith.constant 0 : i32
    %c0_i32_0 = arith.constant 0 : i32
    return %arg0, %c0_i32 : i32, i32
  }
  func.func @transform_4(%arg0: i32) -> (i32, i32) {
    %c0_i32 = arith.constant 0 : i32
    %c0_i32_0 = arith.constant 0 : i32
    return %arg0, %c0_i32 : i32, i32
  }
}

module attributes {stable_mosaic.version = 11 : i64} {
  func.func @_fused_linear_kernel(%arg0: i32, %arg1: memref<32x32xbf16, #tpu.memory_space<vmem>>, %arg2: memref<1x32xf32, #tpu.memory_space<vmem>>, %arg3: memref<1x32xf32, #tpu.memory_space<vmem>>, %arg4: memref<32x128xbf16, #tpu.memory_space<vmem>>, %arg5: memref<1x128xf32, #tpu.memory_space<vmem>>, %arg6: memref<32x128xbf16, #tpu.memory_space<vmem>>) attributes {dimension_semantics = [#tpu.dimension_semantics<parallel>], iteration_bounds = array<i64: 1>, scalar_prefetch = 0 : i64, scratch_operands = 0 : i64, tpu.core_type = #tpu.core_type<tc>, window_params = [{transform_indices = @transform_0, window_bounds = array<i64: 32, 32>}, {pipeline_mode = #tpu.pipeline_mode<synchronous>, transform_indices = @transform_1, window_bounds = array<i64: 1, 32>}, {pipeline_mode = #tpu.pipeline_mode<synchronous>, transform_indices = @transform_2, window_bounds = array<i64: 1, 32>}, {pipeline_mode = #tpu.pipeline_mode<synchronous>, transform_indices = @transform_3, window_bounds = array<i64: 32, 128>}, {pipeline_mode = #tpu.pipeline_mode<synchronous>, transform_indices = @transform_4, window_bounds = array<i64: 1, 128>}, {transform_indices = @transform_5, window_bounds = array<i64: 32, 128>}]} {
    %c0 = arith.constant 0 : index
    %c0_0 = arith.constant 0 : index
    %0 = vector.load %arg1[%c0, %c0_0] : memref<32x32xbf16, #tpu.memory_space<vmem>>, vector<32x32xbf16>
    %1 = arith.extf %0 : vector<32x32xbf16> to vector<32x32xf32>
    %cst = arith.constant dense<0.000000e+00> : vector<32xf32>
    %2 = vector.multi_reduction <add>, %1, %cst [1] : vector<32x32xf32> to vector<32xf32>
    %3 = vector.shape_cast %2 : vector<32xf32> to vector<32x1xf32>
    %cst_1 = arith.constant 3.200000e+01 : f32
    %4 = vector.broadcast %cst_1 : f32 to vector<32x1xf32>
    %5 = arith.divf %3, %4 : vector<32x1xf32>
    %6 = vector.broadcast %5 : vector<32x1xf32> to vector<32x32xf32>
    %7 = arith.subf %1, %6 : vector<32x32xf32>
    %8 = arith.mulf %7, %7 : vector<32x32xf32>
    %cst_2 = arith.constant dense<0.000000e+00> : vector<32xf32>
    %9 = vector.multi_reduction <add>, %8, %cst_2 [1] : vector<32x32xf32> to vector<32xf32>
    %10 = vector.shape_cast %9 : vector<32xf32> to vector<32x1xf32>
    %cst_3 = arith.constant 3.200000e+01 : f32
    %11 = vector.broadcast %cst_3 : f32 to vector<32x1xf32>
    %12 = arith.divf %10, %11 : vector<32x1xf32>
    %13 = vector.broadcast %5 : vector<32x1xf32> to vector<32x32xf32>
    %14 = arith.subf %1, %13 : vector<32x32xf32>
    %cst_4 = arith.constant 9.99999974E-6 : f32
    %15 = vector.broadcast %cst_4 : f32 to vector<32x1xf32>
    %16 = arith.addf %12, %15 : vector<32x1xf32>
    %17 = math.rsqrt %16 : vector<32x1xf32>
    %18 = vector.broadcast %17 : vector<32x1xf32> to vector<32x32xf32>
    %19 = arith.mulf %14, %18 : vector<32x32xf32>
    %c0_5 = arith.constant 0 : index
    %c0_6 = arith.constant 0 : index
    %20 = vector.load %arg2[%c0_5, %c0_6] : memref<1x32xf32, #tpu.memory_space<vmem>>, vector<1x32xf32>
    %21 = vector.broadcast %20 : vector<1x32xf32> to vector<32x32xf32>
    %22 = arith.mulf %19, %21 : vector<32x32xf32>
    %c0_7 = arith.constant 0 : index
    %c0_8 = arith.constant 0 : index
    %23 = vector.load %arg3[%c0_7, %c0_8] : memref<1x32xf32, #tpu.memory_space<vmem>>, vector<1x32xf32>
    %24 = vector.broadcast %23 : vector<1x32xf32> to vector<32x32xf32>
    %25 = arith.addf %22, %24 : vector<32x32xf32>
    %26 = arith.truncf %25 : vector<32x32xf32> to vector<32x32xbf16>
    %c0_9 = arith.constant 0 : index
    %c0_10 = arith.constant 0 : index
    %27 = vector.load %arg4[%c0_9, %c0_10] : memref<32x128xbf16, #tpu.memory_space<vmem>>, vector<32x128xbf16>
    %cst_11 = arith.constant dense<0.000000e+00> : vector<32x128xf32>
    %28 = tpu.matmul %26, %27, %cst_11 {dimension_numbers = #tpu.dot_dimension_numbers<[1], [0], [0], [1], [0, 0, 1, 1], [], []>} : vector<32x32xbf16>, vector<32x128xbf16>, vector<32x128xf32> -> vector<32x128xf32>
    %c0_12 = arith.constant 0 : index
    %c0_13 = arith.constant 0 : index
    %29 = vector.load %arg5[%c0_12, %c0_13] : memref<1x128xf32, #tpu.memory_space<vmem>>, vector<1x128xf32>
    %30 = vector.broadcast %29 : vector<1x128xf32> to vector<32x128xf32>
    %31 = arith.addf %28, %30 : vector<32x128xf32>
    %cst_14 = arith.constant 5.000000e-01 : f32
    %32 = vector.broadcast %cst_14 : f32 to vector<32x128xf32>
    %33 = arith.mulf %32, %31 : vector<32x128xf32>
    %cst_15 = arith.constant 0.707106769 : f32
    %34 = vector.broadcast %cst_15 : f32 to vector<32x128xf32>
    %35 = arith.mulf %31, %34 : vector<32x128xf32>
    %36 = math.absf %35 : vector<32x128xf32>
    %cst_16 = arith.constant 0.327591091 : f32
    %37 = vector.broadcast %cst_16 : f32 to vector<32x128xf32>
    %38 = arith.mulf %37, %36 : vector<32x128xf32>
    %cst_17 = arith.constant 1.000000e+00 : f32
    %39 = vector.broadcast %cst_17 : f32 to vector<32x128xf32>
    %40 = arith.addf %39, %38 : vector<32x128xf32>
    %cst_18 = arith.constant 1.000000e+00 : f32
    %41 = vector.broadcast %cst_18 : f32 to vector<32x128xf32>
    %42 = arith.divf %41, %40 : vector<32x128xf32>
    %cst_19 = arith.constant 1.06140542 : f32
    %43 = vector.broadcast %cst_19 : f32 to vector<32x128xf32>
    %44 = arith.mulf %43, %42 : vector<32x128xf32>
    %cst_20 = arith.constant -1.45315206 : f32
    %45 = vector.broadcast %cst_20 : f32 to vector<32x128xf32>
    %46 = arith.addf %44, %45 : vector<32x128xf32>
    %47 = arith.mulf %46, %42 : vector<32x128xf32>
    %cst_21 = arith.constant 1.42141378 : f32
    %48 = vector.broadcast %cst_21 : f32 to vector<32x128xf32>
    %49 = arith.addf %47, %48 : vector<32x128xf32>
    %50 = arith.mulf %49, %42 : vector<32x128xf32>
    %cst_22 = arith.constant -0.284496725 : f32
    %51 = vector.broadcast %cst_22 : f32 to vector<32x128xf32>
    %52 = arith.addf %50, %51 : vector<32x128xf32>
    %53 = arith.mulf %52, %42 : vector<32x128xf32>
    %cst_23 = arith.constant 0.254829586 : f32
    %54 = vector.broadcast %cst_23 : f32 to vector<32x128xf32>
    %55 = arith.addf %53, %54 : vector<32x128xf32>
    %56 = arith.mulf %55, %42 : vector<32x128xf32>
    %cst_24 = arith.constant 0.000000e+00 : f32
    %57 = vector.broadcast %cst_24 : f32 to vector<32x128xf32>
    %58 = arith.subf %57, %36 : vector<32x128xf32>
    %59 = arith.mulf %58, %36 : vector<32x128xf32>
    %60 = math.exp %59 : vector<32x128xf32>
    %61 = arith.mulf %56, %60 : vector<32x128xf32>
    %cst_25 = arith.constant 1.000000e+00 : f32
    %62 = vector.broadcast %cst_25 : f32 to vector<32x128xf32>
    %63 = arith.subf %62, %61 : vector<32x128xf32>
    %cst_26 = arith.constant 0.000000e+00 : f32
    %64 = vector.broadcast %cst_26 : f32 to vector<32x128xf32>
    %65 = arith.cmpf oge, %35, %64 : vector<32x128xf32>
    %cst_27 = arith.constant 0.000000e+00 : f32
    %66 = vector.broadcast %cst_27 : f32 to vector<32x128xf32>
    %67 = arith.subf %66, %63 : vector<32x128xf32>
    %68 = arith.select %65, %63, %67 : vector<32x128xi1>, vector<32x128xf32>
    %cst_28 = arith.constant 1.000000e+00 : f32
    %69 = vector.broadcast %cst_28 : f32 to vector<32x128xf32>
    %70 = arith.addf %69, %68 : vector<32x128xf32>
    %71 = arith.mulf %33, %70 : vector<32x128xf32>
    %72 = arith.truncf %71 : vector<32x128xf32> to vector<32x128xbf16>
    %c0_29 = arith.constant 0 : index
    %c0_30 = arith.constant 0 : index
    %73 = vector.load %arg6[%c0_29, %c0_30] : memref<32x128xbf16, #tpu.memory_space<vmem>>, vector<32x128xbf16>
    tpu.vector_store %arg6[%c0_29, %c0_30], %72 {strides = array<i32>} : memref<32x128xbf16, #tpu.memory_space<vmem>>, vector<32x128xbf16>,
    return
  }
  func.func @transform_0(%arg0: i32) -> (i32, i32) {
    %c0_i32 = arith.constant 0 : i32
    %c0_i32_0 = arith.constant 0 : i32
    return %arg0, %c0_i32 : i32, i32
  }
  func.func @transform_1(%arg0: i32) -> (i32, i32) {
    %c0_i32 = arith.constant 0 : i32
    %c0_i32_0 = arith.constant 0 : i32
    %c0_i32_1 = arith.constant 0 : i32
    return %c0_i32, %c0_i32_0 : i32, i32
  }
  func.func @transform_2(%arg0: i32) -> (i32, i32) {
    %c0_i32 = arith.constant 0 : i32
    %c0_i32_0 = arith.constant 0 : i32
    %c0_i32_1 = arith.constant 0 : i32
    return %c0_i32, %c0_i32_0 : i32, i32
  }
  func.func @transform_3(%arg0: i32) -> (i32, i32) {
    %c0_i32 = arith.constant 0 : i32
    %c0_i32_0 = arith.constant 0 : i32
    %c0_i32_1 = arith.constant 0 : i32
    return %c0_i32, %c0_i32_0 : i32, i32
  }
  func.func @transform_4(%arg0: i32) -> (i32, i32) {
    %c0_i32 = arith.constant 0 : i32
    %c0_i32_0 = arith.constant 0 : i32
    %c0_i32_1 = arith.constant 0 : i32
    return %c0_i32, %c0_i32_0 : i32, i32
  }
  func.func @transform_5(%arg0: i32) -> (i32, i32) {
    %c0_i32 = arith.constant 0 : i32
    %c0_i32_0 = arith.constant 0 : i32
    return %arg0, %c0_i32 : i32, i32
  }
}

module attributes {stable_mosaic.version = 11 : i64} {
  func.func @_fused_linear_kernel(%arg0: i32, %arg1: memref<2x32xbf16, #tpu.memory_space<vmem>>, %arg2: memref<32x16xbf16, #tpu.memory_space<vmem>>, %arg3: memref<1x16xf32, #tpu.memory_space<vmem>>, %arg4: memref<2x16xf32, #tpu.memory_space<vmem>>) attributes {dimension_semantics = [#tpu.dimension_semantics<parallel>], iteration_bounds = array<i64: 1>, scalar_prefetch = 0 : i64, scratch_operands = 0 : i64, tpu.core_type = #tpu.core_type<tc>, window_params = [{transform_indices = @transform_0, window_bounds = array<i64: 2, 32>}, {pipeline_mode = #tpu.pipeline_mode<synchronous>, transform_indices = @transform_1, window_bounds = array<i64: 32, 16>}, {pipeline_mode = #tpu.pipeline_mode<synchronous>, transform_indices = @transform_2, window_bounds = array<i64: 1, 16>}, {transform_indices = @transform_3, window_bounds = array<i64: 2, 16>}]} {
    %c0 = arith.constant 0 : index
    %c0_0 = arith.constant 0 : index
    %0 = vector.load %arg1[%c0, %c0_0] : memref<2x32xbf16, #tpu.memory_space<vmem>>, vector<2x32xbf16>
    %c0_1 = arith.constant 0 : index
    %c0_2 = arith.constant 0 : index
    %1 = vector.load %arg2[%c0_1, %c0_2] : memref<32x16xbf16, #tpu.memory_space<vmem>>, vector<32x16xbf16>
    %cst = arith.constant dense<0.000000e+00> : vector<2x16xf32>
    %2 = tpu.matmul %0, %1, %cst {dimension_numbers = #tpu.dot_dimension_numbers<[1], [0], [0], [1], [0, 0, 1, 1], [], []>} : vector<2x32xbf16>, vector<32x16xbf16>, vector<2x16xf32> -> vector<2x16xf32>
    %c0_3 = arith.constant 0 : index
    %c0_4 = arith.constant 0 : index
    %3 = vector.load %arg3[%c0_3, %c0_4] : memref<1x16xf32, #tpu.memory_space<vmem>>, vector<1x16xf32>
    %4 = vector.broadcast %3 : vector<1x16xf32> to vector<2x16xf32>
    %5 = arith.addf %2, %4 : vector<2x16xf32>
    %c0_5 = arith.constant 0 : index
    %c0_6 = arith.constant 0 : index
    %6 = vector.load %arg4[%c0_5, %c0_6] : memref<2x16xf32, #tpu.memory_space<vmem>>, vector<2x16xf32>
    tpu.vector_store %arg4[%c0_5, %c0_6], %5 {strides = array<i32>} : memref<2x16xf32, #tpu.memory_space<vmem>>, vector<2x16xf32>,
    return
  }
  func.func @transform_0(%arg0: i32) -> (i32, i32) {
    %c0_i32 = arith.constant 0 : i32
    %c0_i32_0 = arith.constant 0 : i32
    return %arg0, %c0_i32 : i32, i32
  }
  func.func @transform_1(%arg0: i32) -> (i32, i32) {
    %c0_i32 = arith.constant 0 : i32
    %c0_i32_0 = arith.constant 0 : i32
    %c0_i32_1 = arith.constant 0 : i32
    return %c0_i32, %c0_i32_0 : i32, i32
  }
  func.func @transform_2(%arg0: i32) -> (i32, i32) {
    %c0_i32 = arith.constant 0 : i32
    %c0_i32_0 = arith.constant 0 : i32
    %c0_i32_1 = arith.constant 0 : i32
    return %c0_i32, %c0_i32_0 : i32, i32
  }
  func.func @transform_3(%arg0: i32) -> (i32, i32) {
    %c0_i32 = arith.constant 0 : i32
    %c0_i32_0 = arith.constant 0 : i32
    return %arg0, %c0_i32 : i32, i32
  }
}

module attributes {stable_mosaic.version = 11 : i64} {
  func.func @_layernorm_kernel(%arg0: i32, %arg1: memref<2x32xbf16, #tpu.memory_space<vmem>>, %arg2: memref<1x32xf32, #tpu.memory_space<vmem>>, %arg3: memref<1x32xf32, #tpu.memory_space<vmem>>, %arg4: memref<2x32xbf16, #tpu.memory_space<vmem>>) attributes {dimension_semantics = [#tpu.dimension_semantics<parallel>], iteration_bounds = array<i64: 1>, scalar_prefetch = 0 : i64, scratch_operands = 0 : i64, tpu.core_type = #tpu.core_type<tc>, window_params = [{transform_indices = @transform_0, window_bounds = array<i64: 2, 32>}, {pipeline_mode = #tpu.pipeline_mode<synchronous>, transform_indices = @transform_1, window_bounds = array<i64: 1, 32>}, {pipeline_mode = #tpu.pipeline_mode<synchronous>, transform_indices = @transform_2, window_bounds = array<i64: 1, 32>}, {transform_indices = @transform_3, window_bounds = array<i64: 2, 32>}]} {
    %c0 = arith.constant 0 : index
    %c0_0 = arith.constant 0 : index
    %0 = vector.load %arg1[%c0, %c0_0] : memref<2x32xbf16, #tpu.memory_space<vmem>>, vector<2x32xbf16>
    %1 = arith.extf %0 : vector<2x32xbf16> to vector<2x32xf32>
    %cst = arith.constant dense<0.000000e+00> : vector<2xf32>
    %2 = vector.multi_reduction <add>, %1, %cst [1] : vector<2x32xf32> to vector<2xf32>
    %3 = vector.shape_cast %2 : vector<2xf32> to vector<2x1xf32>
    %cst_1 = arith.constant 3.200000e+01 : f32
    %4 = vector.broadcast %cst_1 : f32 to vector<2x1xf32>
    %5 = arith.divf %3, %4 : vector<2x1xf32>
    %6 = vector.broadcast %5 : vector<2x1xf32> to vector<2x32xf32>
    %7 = arith.subf %1, %6 : vector<2x32xf32>
    %8 = arith.mulf %7, %7 : vector<2x32xf32>
    %cst_2 = arith.constant dense<0.000000e+00> : vector<2xf32>
    %9 = vector.multi_reduction <add>, %8, %cst_2 [1] : vector<2x32xf32> to vector<2xf32>
    %10 = vector.shape_cast %9 : vector<2xf32> to vector<2x1xf32>
    %cst_3 = arith.constant 3.200000e+01 : f32
    %11 = vector.broadcast %cst_3 : f32 to vector<2x1xf32>
    %12 = arith.divf %10, %11 : vector<2x1xf32>
    %13 = vector.broadcast %5 : vector<2x1xf32> to vector<2x32xf32>
    %14 = arith.subf %1, %13 : vector<2x32xf32>
    %cst_4 = arith.constant 9.99999974E-6 : f32
    %15 = vector.broadcast %cst_4 : f32 to vector<2x1xf32>
    %16 = arith.addf %12, %15 : vector<2x1xf32>
    %17 = math.rsqrt %16 : vector<2x1xf32>
    %18 = vector.broadcast %17 : vector<2x1xf32> to vector<2x32xf32>
    %19 = arith.mulf %14, %18 : vector<2x32xf32>
    %c0_5 = arith.constant 0 : index
    %c0_6 = arith.constant 0 : index
    %20 = vector.load %arg2[%c0_5, %c0_6] : memref<1x32xf32, #tpu.memory_space<vmem>>, vector<1x32xf32>
    %21 = vector.broadcast %20 : vector<1x32xf32> to vector<2x32xf32>
    %22 = arith.mulf %19, %21 : vector<2x32xf32>
    %c0_7 = arith.constant 0 : index
    %c0_8 = arith.constant 0 : index
    %23 = vector.load %arg3[%c0_7, %c0_8] : memref<1x32xf32, #tpu.memory_space<vmem>>, vector<1x32xf32>
    %24 = vector.broadcast %23 : vector<1x32xf32> to vector<2x32xf32>
    %25 = arith.addf %22, %24 : vector<2x32xf32>
    %26 = arith.truncf %25 : vector<2x32xf32> to vector<2x32xbf16>
    %c0_9 = arith.constant 0 : index
    %c0_10 = arith.constant 0 : index
    %27 = vector.load %arg4[%c0_9, %c0_10] : memref<2x32xbf16, #tpu.memory_space<vmem>>, vector<2x32xbf16>
    tpu.vector_store %arg4[%c0_9, %c0_10], %26 {strides = array<i32>} : memref<2x32xbf16, #tpu.memory_space<vmem>>, vector<2x32xbf16>,
    return
  }
  func.func @transform_0(%arg0: i32) -> (i32, i32) {
    %c0_i32 = arith.constant 0 : i32
    %c0_i32_0 = arith.constant 0 : i32
    return %arg0, %c0_i32 : i32, i32
  }
  func.func @transform_1(%arg0: i32) -> (i32, i32) {
    %c0_i32 = arith.constant 0 : i32
    %c0_i32_0 = arith.constant 0 : i32
    %c0_i32_1 = arith.constant 0 : i32
    return %c0_i32, %c0_i32_0 : i32, i32
  }
  func.func @transform_2(%arg0: i32) -> (i32, i32) {
    %c0_i32 = arith.constant 0 : i32
    %c0_i32_0 = arith.constant 0 : i32
    %c0_i32_1 = arith.constant 0 : i32
    return %c0_i32, %c0_i32_0 : i32, i32
  }
  func.func @transform_3(%arg0: i32) -> (i32, i32) {
    %c0_i32 = arith.constant 0 : i32
    %c0_i32_0 = arith.constant 0 : i32
    return %arg0, %c0_i32 : i32, i32
  }
}

</mosaic_0001>

<bundles_post_ra>
// kernel: vit_encode_image.16
= control target key start
LH: loop header
LB: loop body
LE: loop exit
PB: predicated region body
PF: predicated region fallthrough
CT: control target
= control target key end

     0   :  { %vm29_vm0 = vcmask 261120   ;;  %vm201_vm1 = vcmask 781312   ;;  %s329_s0 = inlined_call_operand.vmem [shape: bf16[32,32], index: 0, kind: input, shape index: {}]   ;;  %s330_s3 = inlined_call_operand.vmem [shape: bf16[32,96], index: 3, kind: input, shape index: {}]   ;;  %s331_s1 = inlined_call_operand.vmem [shape: f32[1,32], index: 1, kind: input, shape index: {}]   ;;  %s332_s2 = inlined_call_operand.vmem [shape: f32[1,32], index: 2, kind: input, shape index: {}]   ;;  %s333_s4 = inlined_call_operand.vmem [shape: f32[1,96], index: 4, kind: input, shape index: {}]   ;;  %s334_s5 = inlined_call_operand.vmem [shape: bf16[32,96], index: 5, kind: output, shape index: {}]  }
   0x1   :  { %v226_v0 = vld [vmem:[%s329_s0] sm:$0xff]   ;;  %v233_v1 = vld [vmem:[%s329_s0 + $0x8] sm:$0xff]  }
   0x2   :  { %v227_v2 = vunpack.c.l.bf16 %v226_v0  ;;  %v231_v3 = vunpack.c.l.bf16 %v233_v1  ;;  %v228_v4 = vunpack.c.h.bf16 %v226_v0  ;;  %v232_v5 = vunpack.c.h.bf16 %v233_v1  ;;  %v246_v30 = vld [vmem:[%s330_s3 + $0x8] sm:$0xff]   ;;  %v247_v31 = vld [vmem:[%s330_s3] sm:$0xff]  }
   0x3   :  { %238 = vmatprep.subr.bf16.mxu0 %v246_v30  ;;  %v210_v46 = vld [vmem:[%s331_s1] ss:$0 sm:$0xff] }
   0x4   :  { %v30_v6 = vsel %vm29_vm0, %v227_v2, 0.0  ;;  %v36_v7 = vsel %vm29_vm0, %v231_v3, 0.0  ;;  %v33_v8 = vsel %vm29_vm0, %v228_v4, 0.0  ;;  %v39_v9 = vsel %vm29_vm0, %v232_v5, 0.0  ;;  %239 = vmatpush3.bf16.msra.mxu0 %v246_v30  ;;  %v211_v51 = vld [vmem:[%s332_s2] ss:$0 sm:$0xff] }
   0x5   :  { %31 = vadd.xlane.f32.xlu0 %v30_v6  ;;  %37 = vadd.xlane.f32.xlu1 %v36_v7  ;;  %v212_v0 = vld [vmem:[%s333_s4] ss:$0 sm:$0xff] }
   0x6   :  { %240 = vmatprep.subr.bf16.mxu0 %v247_v31 }
   0x8   :  { %241 = vmatpush3.bf16.msra.mxu0 %v247_v31 }
   0x9   :  { %34 = vadd.xlane.f32.xlu0 %v33_v8  ;;  %40 = vadd.xlane.f32.xlu1 %v39_v9 }
  0x8e   :  { %v32_v10 = vpop.xlane.xlu0 %31  ;;  %v38_v11 = vpop.xlane.xlu1 %37 }
  0x8f   :  { %v43_v12 = vmul.f32 0.03125, %v32_v10  ;;  %v45_v13 = vmul.f32 0.03125, %v38_v11 }
  0x91   :  { %v47_v14 = vsub.f32 %v227_v2, %v43_v12  ;;  %v49_v15 = vsub.f32 %v231_v3, %v45_v13 }
  0x92   :  { %v35_v16 = vpop.xlane.xlu0 %34  ;;  %v41_v17 = vpop.xlane.xlu1 %40 }
  0x93   :  { %v44_v18 = vmul.f32 0.03125, %v35_v16  ;;  %v46_v19 = vmul.f32 0.03125, %v41_v17  ;;  %v51_v20 = vmul.f32 %v47_v14, %v47_v14  ;;  %v53_v21 = vmul.f32 %v49_v15, %v49_v15 }
  0x95   :  { %v48_v22 = vsub.f32 %v228_v4, %v44_v18  ;;  %v50_v23 = vsub.f32 %v232_v5, %v46_v19  ;;  %v55_v24 = vsel %vm29_vm0, %v51_v20, 0.0  ;;  %v61_v25 = vsel %vm29_vm0, %v53_v21, 0.0 }
  0x96   :  { %56 = vadd.xlane.f32.xlu0 %v55_v24 }
  0x97   :  { %v52_v26 = vmul.f32 %v48_v22, %v48_v22  ;;  %v54_v27 = vmul.f32 %v50_v23, %v50_v23 }
  0x99   :  { %v58_v28 = vsel %vm29_vm0, %v52_v26, 0.0  ;;  %v64_v29 = vsel %vm29_vm0, %v54_v27, 0.0 }
  0x9a   :  { %62 = vadd.xlane.f32.xlu0 %v61_v25  ;;  %59 = vadd.xlane.f32.xlu1 %v58_v28 }
  0x9e   :  { %65 = vadd.xlane.f32.xlu1 %v64_v29 }
 0x11f   :  { %v57_v32 = vpop.xlane.xlu0 %56 }
 0x120   :  { %v67_v33 = vmul.f32 0.03125, %v57_v32 }
 0x122   :  { %v71_v34 = vadd.f32 1e-05, %v67_v33 }
 0x123   :  { %v60_v35 = vpop.xlane.xlu1 %59  ;;  %v63_v36 = vpop.xlane.xlu0 %62 }
 0x124   :  { %248 = vrsqrt.f32 %v71_v34  ;;  %v68_v37 = vmul.f32 0.03125, %v60_v35  ;;  %v69_v38 = vmul.f32 0.03125, %v63_v36 }
 0x126   :  { %v72_v39 = vadd.f32 1e-05, %v68_v37  ;;  %v73_v40 = vadd.f32 1e-05, %v69_v38 }
 0x127   :  { %v66_v41 = vpop.xlane.xlu1 %65 }
 0x128   :  { %250 = vrsqrt.f32 %v72_v39  ;;  %v70_v42 = vmul.f32 0.03125, %v66_v41 }
 0x129   :  { %252 = vrsqrt.f32 %v73_v40 }
 0x12a   :  { %v74_v43 = vadd.f32 1e-05, %v70_v42 }
 0x12c   :  { %254 = vrsqrt.f32 %v74_v43 }
 0x131   :  { %v249_v44 = vpop.eup %248 }
 0x132   :  { %v79_v45 = vmul.f32 %v249_v44, %v47_v14 }
 0x134   :  { %v90_v50 = vmul.f32 %v210_v46, %v79_v45 }
 0x135   :  { %v251_v47 = vpop.eup %250 }
 0x136   :  { %v253_v48 = vpop.eup %252  ;;  %v80_v49 = vmul.f32 %v251_v47, %v48_v22  ;;  %v101_v55 = vadd.f32 %v211_v51, %v90_v50 }
 0x137   :  { %v81_v52 = vmul.f32 %v253_v48, %v49_v15 }
 0x138   :  { %v91_v53 = vmul.f32 %v210_v46, %v80_v49 }
 0x139   :  { %v255_v54 = vpop.eup %254  ;;  %v92_v58 = vmul.f32 %v210_v46, %v81_v52 }
 0x13a   :  { %v102_v56 = vadd.f32 %v211_v51, %v91_v53  ;;  %v82_v57 = vmul.f32 %v255_v54, %v50_v23 }
 0x13b   :  { %v103_v61 = vadd.f32 %v211_v51, %v92_v58 }
 0x13c   :  { %v105_v59 = vpack.c.bf16 %v102_v56, %v101_v55  ;;  %v93_v60 = vmul.f32 %v210_v46, %v82_v57 }
 0x13e   :  { %242 = vmatprep.mubr.msk.bf16.mxu0 %vm29_vm0, %v105_v59  ;;  %v104_v62 = vadd.f32 %v211_v51, %v93_v60 }
 0x140   :  { %v106_v63 = vpack.c.bf16 %v104_v62, %v103_v61 }
 0x142   :  { %243 = vmatmul.mubr.msk.bf16.vlgmr.msra.gmra.mxu0 %vm29_vm0, %v106_v63 }
 0x202   :  { %v244_v1 = vpop.f32.mrf.mxu0 }
 0x203   :  { %v179_v2 = vadd.f32 %v244_v1, %v212_v0 }
 0x204   :  { %v170_v3 = vpop.f32.mrf.mxu0 }
 0x205   :  { %v223_v4 = vpack.c.bf16 %v179_v2, %v179_v2  ;;  %v171_v5 = vadd.f32 %v212_v0, %v170_v3 }
 0x206   :  { %v245_v6 = vpop.f32.mrf.mxu0 }
 0x207   :  { %204 = vst.msk [vmem:[%s334_s5 + $0x8] sm:$0xf] %vm201_vm1, %v223_v4  ;;  %v221_v7 = vpack.c.bf16 %v171_v5, %v171_v5  ;;  %v182_v8 = vadd.f32 %v245_v6, %v212_v0 }
 0x208   :  { %v173_v9 = vpop.f32.mrf.mxu0 }
 0x209   :  { %202 = vst.msk [vmem:[%s334_s5] sm:$0xf] %vm201_vm1, %v221_v7  ;;  %v224_v10 = vpack.c.bf16 %v182_v8, %v182_v8  ;;  %v174_v11 = vadd.f32 %v212_v0, %v173_v9 }
 0x20b   :  { %205 = vst.msk [vmem:[%s334_s5 + $0xc] sm:$0xf] %vm201_vm1, %v224_v10  ;;  %v222_v12 = vpack.c.bf16 %v174_v11, %v174_v11 }
 0x20d   :  { %203 = vst.msk [vmem:[%s334_s5 + $0x4] sm:$0xf] %vm201_vm1, %v222_v12 }

// kernel: vit_encode_image.14
= control target key start
LH: loop header
LB: loop body
LE: loop exit
PB: predicated region body
PF: predicated region fallthrough
CT: control target
= control target key end

     0   :  { %v207_v0 = vmov 0   ;;  %vm125_vm0 = vcmask 523264   ;;  %vm170_vm1 = vcmask 257024   ;;  %s273_s1 = inlined_call_operand.vmem [shape: bf16[192,32], index: 1, kind: input, shape index: {}]   ;;  %s274_s0 = inlined_call_operand.vmem [shape: bf16[8,192], index: 0, kind: input, shape index: {}]   ;;  %s275_s2 = inlined_call_operand.vmem [shape: f32[1,32], index: 2, kind: input, shape index: {}]   ;;  %s276_s3 = inlined_call_operand.vmem [shape: bf16[8,32], index: 3, kind: output, shape index: {}]  }
   0x1   :  { %129 = vmatprep.subr.bf16.mxu0 %v207_v0  ;;  %v193_v1 = vld [vmem:[%s273_s1 + $0x38] sm:$0xff]   ;;  %v194_v2 = vld [vmem:[%s273_s1 + $0x30] sm:$0xff]   ;;  %v195_v3 = vld [vmem:[%s273_s1 + $0x28] sm:$0xff]  }
   0x2   :  { %130 = vmatpush1.bf16.msra.mxu0 %v193_v1  ;;  %v196_v4 = vld [vmem:[%s273_s1 + $0x20] sm:$0xff]   ;;  %v197_v7 = vld [vmem:[%s273_s1 + $0x18] sm:$0xff]   ;;  %v198_v8 = vld [vmem:[%s273_s1 + $0x10] sm:$0xff]  }
   0x3   :  { %131 = vmatprep.subr.bf16.mxu0 %v207_v0  ;;  %v15_v5 = vld [vmem:[%s274_s0] sm:$0xff]  ;;  %v199_v9 = vld [vmem:[%s273_s1 + $0x8] sm:$0xff]   ;;  %v201_v11 = vld [vmem:[%s273_s1 + $0x58] sm:$0xff]  }
   0x4   :  { %v178_v6 = vcombine.high %v15_v5, %v15_v5  ;;  %v200_v10 = vld [vmem:[%s273_s1] sm:$0xff]   ;;  %v202_v12 = vld [vmem:[%s273_s1 + $0x50] sm:$0xff]   ;;  %v203_v13 = vld [vmem:[%s273_s1 + $0x48] sm:$0xff]   ;;  %v177_v15 = vcombine.low %v15_v5, %v15_v5 }
   0x5   :  { %v204_v14 = vld [vmem:[%s273_s1 + $0x40] sm:$0xff]  }
   0x6   :  { %132 = vmatpush1.bf16.msra.mxu0 %v194_v2  ;;  %191 = vmatprep.mubr.msk.bf16.mxu0 %vm125_vm0, %v178_v6  ;;  %v176_v16 = vld [vmem:[%s275_s2] ss:$0 sm:$0xff] }
   0x7   :  { %133 = vmatprep.subr.bf16.mxu0 %v207_v0 }
   0xa   :  { %134 = vmatpush1.bf16.msra.mxu0 %v195_v3 }
   0xb   :  { %135 = vmatprep.subr.bf16.mxu0 %v207_v0 }
   0xe   :  { %136 = vmatpush1.bf16.msra.mxu0 %v196_v4 }
   0xf   :  { %137 = vmatprep.subr.bf16.mxu0 %v207_v0 }
  0x12   :  { %138 = vmatpush1.bf16.msra.mxu0 %v197_v7 }
  0x13   :  { %139 = vmatprep.subr.bf16.mxu0 %v207_v0 }
  0x16   :  { %140 = vmatpush1.bf16.msra.mxu0 %v198_v8 }
  0x17   :  { %141 = vmatprep.subr.bf16.mxu0 %v207_v0 }
  0x1a   :  { %142 = vmatpush1.bf16.msra.mxu0 %v199_v9 }
  0x1b   :  { %143 = vmatprep.subr.bf16.mxu0 %v207_v0 }
  0x1e   :  { %144 = vmatpush1.bf16.msra.mxu0 %v200_v10 }
  0x1f   :  { %153 = vmatprep.subr.bf16.mxu0 %v207_v0 }
  0x22   :  { %154 = vmatpush2.bf16.msra.mxu0 %v201_v11 }
  0x23   :  { %155 = vmatprep.subr.bf16.mxu0 %v207_v0 }
  0x26   :  { %156 = vmatpush2.bf16.msra.mxu0 %v202_v12 }
  0x27   :  { %157 = vmatprep.subr.bf16.mxu0 %v207_v0 }
  0x2a   :  { %158 = vmatpush2.bf16.msra.mxu0 %v203_v13 }
  0x2b   :  { %159 = vmatprep.subr.bf16.mxu0 %v207_v0 }
  0x2e   :  { %160 = vmatpush2.bf16.msra.mxu0 %v204_v14 }
  0x31   :  { %162 = vmatmul.mubr.bf16.vlgmr.msra.gmra.mxu0 %v177_v15 }
  0xf1   :  { %v163_v17 = vpop.f32.mrf.mxu0 }
  0xf2   :  { %v164_v18 = vadd.f32 %v176_v16, %v163_v17 }
  0xf3   :  { %v165_v19 = vpop.f32.mrf.mxu0 }
  0xf4   :  { %v169_v20 = vpack.c.bf16 %v164_v18, %v164_v18 }
  0xf5   :  { %v166_v21 = vpop.f32.mrf.mxu0 }
  0xf6   :  { %171 = vst.msk [vmem:[%s276_s3] sm:$0xf] %vm170_vm1, %v169_v20 }
  0xf7   :  { %v167_v22 = vpop.f32.mrf.mxu0 }

// kernel: vit_encode_image.15
= control target key start
LH: loop header
LB: loop body
LE: loop exit
PB: predicated region body
PF: predicated region fallthrough
CT: control target
= control target key end

     0   :  { %vm22_vm0 = vcmask 261120   ;;  %vm114_vm1 = vcmask 257024   ;;  %s206_s0 = inlined_call_operand.vmem [shape: bf16[32,32], index: 0, kind: input, shape index: {}]   ;;  %s207_s1 = inlined_call_operand.vmem [shape: f32[1,32], index: 1, kind: input, shape index: {}]   ;;  %s208_s2 = inlined_call_operand.vmem [shape: f32[1,32], index: 2, kind: input, shape index: {}]   ;;  %s209_s3 = inlined_call_operand.vmem [shape: bf16[32,32], index: 3, kind: output, shape index: {}]  }
   0x1   :  { %v134_v0 = vld [vmem:[%s206_s0] sm:$0xff]   ;;  %v141_v1 = vld [vmem:[%s206_s0 + $0x8] sm:$0xff]  }
   0x2   :  { %v135_v2 = vunpack.c.l.bf16 %v134_v0  ;;  %v139_v3 = vunpack.c.l.bf16 %v141_v1  ;;  %v136_v4 = vunpack.c.h.bf16 %v134_v0  ;;  %v140_v5 = vunpack.c.h.bf16 %v141_v1  ;;  %v123_v43 = vld [vmem:[%s207_s1] ss:$0 sm:$0xff] }
   0x3   :  { %v124_v45 = vld [vmem:[%s208_s2] ss:$0 sm:$0xff] }
   0x4   :  { %v23_v6 = vsel %vm22_vm0, %v135_v2, 0.0  ;;  %v29_v7 = vsel %vm22_vm0, %v139_v3, 0.0  ;;  %v26_v8 = vsel %vm22_vm0, %v136_v4, 0.0  ;;  %v32_v9 = vsel %vm22_vm0, %v140_v5, 0.0 }
   0x5   :  { %24 = vadd.xlane.f32.xlu0 %v23_v6  ;;  %30 = vadd.xlane.f32.xlu1 %v29_v7 }
   0x9   :  { %27 = vadd.xlane.f32.xlu0 %v26_v8  ;;  %33 = vadd.xlane.f32.xlu1 %v32_v9 }
  0x8e   :  { %v25_v10 = vpop.xlane.xlu0 %24  ;;  %v31_v11 = vpop.xlane.xlu1 %30 }
  0x8f   :  { %v36_v12 = vmul.f32 0.03125, %v25_v10  ;;  %v38_v13 = vmul.f32 0.03125, %v31_v11 }
  0x91   :  { %v40_v14 = vsub.f32 %v135_v2, %v36_v12  ;;  %v42_v15 = vsub.f32 %v139_v3, %v38_v13 }
  0x92   :  { %v28_v16 = vpop.xlane.xlu0 %27  ;;  %v34_v17 = vpop.xlane.xlu1 %33 }
  0x93   :  { %v37_v18 = vmul.f32 0.03125, %v28_v16  ;;  %v39_v19 = vmul.f32 0.03125, %v34_v17  ;;  %v44_v20 = vmul.f32 %v40_v14, %v40_v14  ;;  %v46_v21 = vmul.f32 %v42_v15, %v42_v15 }
  0x95   :  { %v41_v22 = vsub.f32 %v136_v4, %v37_v18  ;;  %v43_v23 = vsub.f32 %v140_v5, %v39_v19  ;;  %v48_v24 = vsel %vm22_vm0, %v44_v20, 0.0  ;;  %v54_v25 = vsel %vm22_vm0, %v46_v21, 0.0 }
  0x96   :  { %49 = vadd.xlane.f32.xlu0 %v48_v24 }
  0x97   :  { %v45_v26 = vmul.f32 %v41_v22, %v41_v22  ;;  %v47_v27 = vmul.f32 %v43_v23, %v43_v23 }
  0x99   :  { %v51_v28 = vsel %vm22_vm0, %v45_v26, 0.0  ;;  %v57_v29 = vsel %vm22_vm0, %v47_v27, 0.0 }
  0x9a   :  { %55 = vadd.xlane.f32.xlu0 %v54_v25  ;;  %52 = vadd.xlane.f32.xlu1 %v51_v28 }
  0x9e   :  { %58 = vadd.xlane.f32.xlu1 %v57_v29 }
 0x11f   :  { %v50_v30 = vpop.xlane.xlu0 %49 }
 0x120   :  { %v60_v31 = vmul.f32 0.03125, %v50_v30 }
 0x122   :  { %v64_v32 = vadd.f32 1e-05, %v60_v31 }
 0x123   :  { %v53_v33 = vpop.xlane.xlu1 %52  ;;  %v56_v34 = vpop.xlane.xlu0 %55 }
 0x124   :  { %142 = vrsqrt.f32 %v64_v32  ;;  %v61_v35 = vmul.f32 0.03125, %v53_v33  ;;  %v62_v36 = vmul.f32 0.03125, %v56_v34 }
 0x126   :  { %v65_v37 = vadd.f32 1e-05, %v61_v35  ;;  %v66_v38 = vadd.f32 1e-05, %v62_v36 }
 0x127   :  { %v59_v39 = vpop.xlane.xlu1 %58 }
 0x128   :  { %144 = vrsqrt.f32 %v65_v37  ;;  %v63_v40 = vmul.f32 0.03125, %v59_v39 }
 0x129   :  { %146 = vrsqrt.f32 %v66_v38 }
 0x12a   :  { %v67_v41 = vadd.f32 1e-05, %v63_v40 }
 0x12c   :  { %148 = vrsqrt.f32 %v67_v41 }
 0x131   :  { %v143_v42 = vpop.eup %142 }
 0x132   :  { %v72_v44 = vmul.f32 %v143_v42, %v40_v14 }
 0x134   :  { %v83_v46 = vmul.f32 %v123_v43, %v72_v44 }
 0x135   :  { %v145_v47 = vpop.eup %144 }
 0x136   :  { %v147_v48 = vpop.eup %146  ;;  %v94_v49 = vadd.f32 %v124_v45, %v83_v46  ;;  %v73_v50 = vmul.f32 %v145_v47, %v41_v22 }
 0x137   :  { %v74_v51 = vmul.f32 %v147_v48, %v42_v15 }
 0x138   :  { %v129_v52 = vpack.c.bf16 %v94_v49, %v94_v49  ;;  %v84_v53 = vmul.f32 %v123_v43, %v73_v50 }
 0x139   :  { %v149_v54 = vpop.eup %148  ;;  %v85_v55 = vmul.f32 %v123_v43, %v74_v51 }
 0x13a   :  { %115 = vst.msk [vmem:[%s209_s3] sm:$0xf] %vm114_vm1, %v129_v52  ;;  %v95_v56 = vadd.f32 %v124_v45, %v84_v53  ;;  %v75_v57 = vmul.f32 %v149_v54, %v43_v23 }
 0x13b   :  { %v96_v58 = vadd.f32 %v124_v45, %v85_v55 }
 0x13c   :  { %v130_v59 = vpack.c.bf16 %v95_v56, %v95_v56  ;;  %v86_v60 = vmul.f32 %v123_v43, %v75_v57 }
 0x13d   :  { %v131_v61 = vpack.c.bf16 %v96_v58, %v96_v58 }
 0x13e   :  { %116 = vst.msk [vmem:[%s209_s3 + $0x4] sm:$0xf] %vm114_vm1, %v130_v59  ;;  %v97_v62 = vadd.f32 %v124_v45, %v86_v60 }
 0x13f   :  { %117 = vst.msk [vmem:[%s209_s3 + $0x8] sm:$0xf] %vm114_vm1, %v131_v61 }
 0x140   :  { %v132_v63 = vpack.c.bf16 %v97_v62, %v97_v62 }
 0x142   :  { %118 = vst.msk [vmem:[%s209_s3 + $0xc] sm:$0xf] %vm114_vm1, %v132_v63 }

// kernel: vit_encode_image.17
= control target key start
LH: loop header
LB: loop body
LE: loop exit
PB: predicated region body
PF: predicated region fallthrough
CT: control target
= control target key end

     0   :  { %s923_s6 = smov 0   ;;  %s1042_s0 = inlined_call_operand.vmem [shape: bf16[2,16,96], index: 0, kind: input, shape index: {}]   ;;  %s1043_s1 = inlined_call_operand.vmem [shape: bf16[2,16,32], index: 1, kind: output, shape index: {}]  }
   0x1 LB: > { %s727_s7 = sadd.s32 4294967295, %s895_s6   ;;  %p731_p0 = scmp.ge.s32.totalorder %s895_s6, 1  ;;  %s895_s6 = sphi %s923_s6, %s11_s6  }
   0x2   : > { %p87_p1 = scmp.lt.s32.totalorder %s895_s6, 3 }
   0x4   : > { %p88_p2 = pnand %p731_p0, %p87_p1 }
   0x5   : > { %p107_p3 = scmp.lt.s32.totalorder (!%p88_p2), %s727_s7, 1  ;;  %s899_s12 = smov (!%p88_p2), 96  }
   0x6   : > { %91 = sbr.rel (%p88_p2) target bundleno = 1510 (0x5e6), region = 24  ;;  %s900_s13 = smov (!%p88_p2), 64  }
   0x7   : > { %s901_s14 = smov (!%p88_p2), 80   ;;  %s902_s15 = smov (!%p88_p2), 88  }
   0x8   : > { %s903_s16 = smov (!%p88_p2), 120   ;;  %s904_s17 = smov (!%p88_p2), 112  }
   0x9   : > { %s905_s18 = smov (!%p88_p2), 72   ;;  %s906_s19 = smov (!%p88_p2), 104  }
   0xa   : > { %s907_s20 = smov (!%p88_p2), 56   ;;  %s908_s21 = smov (!%p88_p2), 40  }
   0xb   : > { %v897_v0 = vmov 0.0   ;;  %vm898_vm0 = vmmov 0   ;;  %s1045_s7 = smov (!%p107_p3, %s727_s7), 1  ;;  %vm130_vm1 = vcmask 64512   ;;  %v120_v4 = vlaneseq  ;;  %s909_s22 = smov 48  }
   0xc   : > { %769 = vmatprep.subr.bf16.mxu0 %v897_v0  ;;  %771 = vmatprep.mubr.msk.bf16.mxu0 %vm898_vm0, %v897_v0  ;;  %s749_s8 = sshll.u32 %s1045_s7, 3  ;;  %vm184_vm3 = vcmask 130048   ;;  %s910_s23 = smov 8   ;;  %vm658_vm4 = vcmask 195584   ;;  %vm669_vm5 = vcmask 257024  }
   0xd   : > { %775 = vmatprep.subr.bf16.mxu1 %v897_v0  ;;  %777 = vmatprep.mubr.msk.bf16.mxu1 %vm898_vm0, %v897_v0  ;;  %s111_s11 = scalar_lea.vmem %s1042_s0, %s749_s8  ;;  %v954_v5 = vand.u32 127, %v120_v4  ;;  %s911_s24 = smov 16  }
   0xe   : > { %v945_v1 = vld [vmem:[%s111_s11] sm:$0xff]   ;;  %s912_s25 = smov 24   ;;  %s116_s28 = scalar_lea.vmem %s1043_s1, %s749_s8 }
   0xf   : > { %128 = vrot.lane.b32.xlu0 %v945_v1, %s899_s12  ;;  %vm122_vm2 = vcmp.ge.s32.totalorder %v954_v5, 5 }
  0x81   : > { %v129_v2 = vpop.permute.xlu0 %128 }
  0x82   : > { %v135_v3 = vsel %vm130_vm1, %v129_v2, 0 }
  0x83   : > { %770 = vmatpush3.bf16.xpose.msra.mxu0 %v135_v3 }
  0x84   : > { %787 = vmatprep.subr.bf16.mxu0 %v897_v0 }
  0x8a   : > { %772 = vmatmul.mubr.msk.bf16.vlgmr.msra.gmra.mxu0 %vm130_vm1, %v945_v1 }
  0x8b   : > { %789 = vmatprep.mubr.msk.bf16.mxu0 %vm898_vm0, %v897_v0 }
 0x14a   : > { %v171_v6 = vpop.f32.mrf.mxu0 }
 0x14b   : > { %v178_v7 = vmul.f32 0.35355338, %v171_v6 }
 0x14c   : > { %v773_v8 = vpop.f32.mrf.mxu0 }
 0x14d   : > { %v182_v9 = vsel %vm122_vm2, -1e+30, %v178_v7 }
 0x14e   : > { %v174_v10 = vpop.f32.mrf.mxu0  ;;  %v185_v11 = vsel %vm184_vm3, %v182_v9, -inf }
 0x14f   : > { %v179_v12 = vmul.f32 0.35355338, %v174_v10  ;;  %186 = vmax.xlane.f32.xlu0 %v185_v11 }
 0x150   : > { %v774_v13 = vpop.f32.mrf.mxu0 }
 0x151   : > { %v183_v14 = vsel %vm122_vm2, -1e+30, %v179_v12 }
 0x152   : > { %v188_v15 = vsel %vm184_vm3, %v183_v14, -inf }
 0x153   : > { %189 = vmax.xlane.f32.xlu1 %v188_v15 }
 0x164   : > { %208 = vrot.lane.b32.xlu1 %v945_v1, %s900_s13 }
 0x165   : > { %382 = vrot.lane.b32.xlu0 %v945_v1, %s901_s14 }
 0x1d8   : > { %v187_v16 = vpop.xlane.xlu0 %186 }
 0x1d9   : > { %v191_v17 = vsub.f32 %v182_v9, %v187_v16 }
 0x1db   : > { %v193_v18 = vmul.f32 1.442695, %v191_v17 }
 0x1dc   : > { %v190_v19 = vpop.xlane.xlu1 %189  ;;  %v383_v37 = vpop.permute.xlu0 %382 }
 0x1dd   : > { %857 = vpow2.f32 %v193_v18  ;;  %v192_v20 = vsub.f32 %v183_v14, %v190_v19  ;;  %v388_v39 = vsel %vm130_vm1, %v383_v37, 0 }
 0x1df   : > { %v195_v21 = vmul.f32 1.442695, %v192_v20 }
 0x1e0   : > { %v209_v22 = vpop.permute.xlu1 %208 }
 0x1e1   : > { %859 = vpow2.f32 %v195_v21  ;;  %776 = vmatpush3.bf16.msra.mxu1 %v209_v22 }
 0x1e2   : > { %781 = vmatprep.subr.bf16.mxu1 %v897_v0 }
 0x1ea   : > { %v858_v23 = vpop.eup %857 }
 0x1eb   : > { %v197_v24 = vsel %vm184_vm3, %v858_v23, 0.0 }
 0x1ec   : > { %198 = vadd.xlane.f32.xlu1 %v197_v24 }
 0x1ee   : > { %v860_v25 = vpop.eup %859 }
 0x1ef   : > { %v200_v26 = vsel %vm184_vm3, %v860_v25, 0.0 }
 0x1f0   : > { %201 = vadd.xlane.f32.xlu1 %v200_v26 }
 0x201   : > { %257 = vrot.lane.b32.xlu1 %v945_v1, %s902_s15 }
 0x205   : > { %255 = vrot.lane.b32.xlu1 %v945_v1, %s903_s16 }
 0x209   : > { %380 = vrot.lane.b32.xlu1 %v945_v1, %s904_s17 }
 0x20d   : > { %507 = vrot.lane.b32.xlu1 %v945_v1, %s905_s18 }
 0x211   : > { %505 = vrot.lane.b32.xlu1 %v945_v1, %s906_s19 }
 0x275   : > { %v199_v27 = vpop.xlane.xlu1 %198 }
 0x276   : > { %861 = vrcp.f32 %v199_v27 }
 0x279   : > { %v202_v28 = vpop.xlane.xlu1 %201 }
 0x27a   : > { %863 = vrcp.f32 %v202_v28 }
 0x27d   : > { %v258_v31 = vpop.permute.xlu1 %257 }
 0x27e   : > { %v263_v34 = vsel %vm130_vm1, %v258_v31, 0 }
 0x281   : > { %v256_v36 = vpop.permute.xlu1 %255 }
 0x283   : > { %v862_v29 = vpop.eup %861 }
 0x284   : > { %v205_v32 = vmul.f32 %v862_v29, %v858_v23 }
 0x285   : > { %v381_v38 = vpop.permute.xlu1 %380 }
 0x287   : > { %v864_v30 = vpop.eup %863 }
 0x288   : > { %v206_v33 = vmul.f32 %v864_v30, %v860_v25 }
 0x289   : > { %v508_v40 = vpop.permute.xlu1 %507 }
 0x28a   : > { %v207_v35 = vpack.c.bf16 %v206_v33, %v205_v32  ;;  %v513_v41 = vsel %vm130_vm1, %v508_v40, 0 }
 0x28c   : > { %778 = vmatmul.mubr.msk.bf16.vlgmr.msra.gmra.mxu1 %vm184_vm3, %v207_v35 }
 0x28d   : > { %782 = vmatpush3.bf16.xpose.msra.mxu1 %v263_v34  ;;  %783 = vmatprep.mubr.msk.bf16.mxu1 %vm898_vm0, %v897_v0  ;;  %v506_v42 = vpop.permute.xlu1 %505 }
 0x28e   : > { %793 = vmatprep.subr.bf16.mxu1 %v897_v0 }
 0x294   : > { %784 = vmatmul.mubr.msk.bf16.vlgmr.msra.gmra.mxu1 %vm130_vm1, %v256_v36 }
 0x295   : > { %794 = vmatpush3.bf16.xpose.msra.mxu1 %v388_v39  ;;  %795 = vmatprep.mubr.msk.bf16.mxu1 %vm898_vm0, %v897_v0 }
 0x296   : > { %805 = vmatprep.subr.bf16.mxu1 %v897_v0 }
 0x29c   : > { %796 = vmatmul.mubr.msk.bf16.vlgmr.msra.gmra.mxu1 %vm130_vm1, %v381_v38 }
 0x29d   : > { %806 = vmatpush3.bf16.xpose.msra.mxu1 %v513_v41  ;;  %807 = vmatprep.mubr.msk.bf16.mxu1 %vm898_vm0, %v897_v0 }
 0x2a4   : > { %808 = vmatmul.mubr.msk.bf16.vlgmr.msra.gmra.mxu1 %vm130_vm1, %v506_v42 }
 0x34c   : > { %v988_v43 = vpop.f32.mrf.mxu1 }
 0x34e   : > { %v779_v44 = vpop.f32.mrf.mxu1 }
 0x350   : > { %v990_v45 = vpop.f32.mrf.mxu1 }
 0x352   : > { %v780_v46 = vpop.f32.mrf.mxu1 }
 0x354   : > { %v299_v47 = vpop.f32.mrf.mxu1 }
 0x355   : > { %v306_v48 = vmul.f32 0.35355338, %v299_v47 }
 0x356   : > { %v785_v49 = vpop.f32.mrf.mxu1 }
 0x357   : > { %v308_v50 = vsel %vm122_vm2, -1e+30, %v306_v48 }
 0x358   : > { %v302_v51 = vpop.f32.mrf.mxu1  ;;  %v310_v52 = vsel %vm184_vm3, %v308_v50, -inf }
 0x359   : > { %v307_v53 = vmul.f32 0.35355338, %v302_v51  ;;  %311 = vmax.xlane.f32.xlu1 %v310_v52 }
 0x35a   : > { %v786_v54 = vpop.f32.mrf.mxu1 }
 0x35b   : > { %v309_v55 = vsel %vm122_vm2, -1e+30, %v307_v53 }
 0x35c   : > { %v424_v56 = vpop.f32.mrf.mxu1  ;;  %v313_v57 = vsel %vm184_vm3, %v309_v55, -inf }
 0x35d   : > { %v431_v58 = vmul.f32 0.35355338, %v424_v56  ;;  %314 = vmax.xlane.f32.xlu0 %v313_v57 }
 0x35e   : > { %v797_v59 = vpop.f32.mrf.mxu1 }
 0x35f   : > { %v433_v60 = vsel %vm122_vm2, -1e+30, %v431_v58 }
 0x360   : > { %v427_v61 = vpop.f32.mrf.mxu1  ;;  %v435_v62 = vsel %vm184_vm3, %v433_v60, -inf }
 0x361   : > { %v432_v63 = vmul.f32 0.35355338, %v427_v61  ;;  %436 = vmax.xlane.f32.xlu1 %v435_v62 }
 0x362   : > { %v798_v2 = vpop.f32.mrf.mxu1 }
 0x363   : > { %v434_v3 = vsel %vm122_vm2, -1e+30, %v432_v63 }
 0x364   : > { %v549_v4 = vpop.f32.mrf.mxu1  ;;  %v438_v6 = vsel %vm184_vm3, %v434_v3, -inf }
 0x365   : > { %v556_v7 = vmul.f32 0.35355338, %v549_v4  ;;  %439 = vmax.xlane.f32.xlu0 %v438_v6 }
 0x366   : > { %v809_v8 = vpop.f32.mrf.mxu1 }
 0x367   : > { %v558_v9 = vsel %vm122_vm2, -1e+30, %v556_v7 }
 0x368   : > { %v552_v10 = vpop.f32.mrf.mxu1  ;;  %v560_v11 = vsel %vm184_vm3, %v558_v9, -inf }
 0x369   : > { %v557_v12 = vmul.f32 0.35355338, %v552_v10  ;;  %561 = vmax.xlane.f32.xlu1 %v560_v11 }
 0x36a   : > { %v810_v13 = vpop.f32.mrf.mxu1 }
 0x36b   : > { %v559_v14 = vsel %vm122_vm2, -1e+30, %v557_v12 }
 0x36c   : > { %v563_v15 = vsel %vm184_vm3, %v559_v14, -inf }
 0x36d   : > { %564 = vmax.xlane.f32.xlu0 %v563_v15 }
 0x37a   : > { %333 = vrot.lane.b32.xlu1 %v945_v1, %s907_s20 }
 0x3e2   : > { %v312_v16 = vpop.xlane.xlu1 %311 }
 0x3e3   : > { %v316_v17 = vsub.f32 %v308_v50, %v312_v16 }
 0x3e5   : > { %v318_v18 = vmul.f32 1.442695, %v316_v17 }
 0x3e6   : > { %v315_v19 = vpop.xlane.xlu0 %314 }
 0x3e7   : > { %865 = vpow2.f32 %v318_v18  ;;  %v317_v20 = vsub.f32 %v309_v55, %v315_v19 }
 0x3e9   : > { %v320_v21 = vmul.f32 1.442695, %v317_v20 }
 0x3ea   : > { %v437_v22 = vpop.xlane.xlu1 %436 }
 0x3eb   : > { %867 = vpow2.f32 %v320_v21  ;;  %v441_v23 = vsub.f32 %v433_v60, %v437_v22 }
 0x3ed   : > { %v443_v24 = vmul.f32 1.442695, %v441_v23 }
 0x3ee   : > { %v440_v25 = vpop.xlane.xlu0 %439 }
 0x3ef   : > { %869 = vpow2.f32 %v443_v24  ;;  %v442_v5 = vsub.f32 %v434_v3, %v440_v25 }
 0x3f1   : > { %v445_v26 = vmul.f32 1.442695, %v442_v5 }
 0x3f2   : > { %v562_v27 = vpop.xlane.xlu1 %561 }
 0x3f3   : > { %871 = vpow2.f32 %v445_v26  ;;  %v566_v28 = vsub.f32 %v558_v9, %v562_v27 }
 0x3f4   : > { %v866_v29 = vpop.eup %865 }
 0x3f5   : > { %v568_v30 = vmul.f32 1.442695, %v566_v28  ;;  %v322_v31 = vsel %vm184_vm3, %v866_v29, 0.0 }
 0x3f6   : > { %v565_v32 = vpop.xlane.xlu0 %564  ;;  %323 = vadd.xlane.f32.xlu1 %v322_v31  ;;  %v334_v33 = vpop.permute.xlu1 %333 }
 0x3f7   : > { %873 = vpow2.f32 %v568_v30  ;;  %v567_v34 = vsub.f32 %v559_v14, %v565_v32  ;;  %788 = vmatpush3.bf16.msra.mxu0 %v334_v33 }
 0x3f8   : > { %v868_v35 = vpop.eup %867  ;;  %799 = vmatprep.subr.bf16.mxu0 %v897_v0 }
 0x3f9   : > { %v570_v36 = vmul.f32 1.442695, %v567_v34  ;;  %v325_v37 = vsel %vm184_vm3, %v868_v35, 0.0 }
 0x3fa   : > { %326 = vadd.xlane.f32.xlu0 %v325_v37 }
 0x3fb   : > { %875 = vpow2.f32 %v570_v36 }
 0x3fc   : > { %v870_v38 = vpop.eup %869 }
 0x3fd   : > { %v447_v39 = vsel %vm184_vm3, %v870_v38, 0.0 }
 0x3fe   : > { %448 = vadd.xlane.f32.xlu1 %v447_v39 }
 0x400   : > { %v872_v40 = vpop.eup %871 }
 0x401   : > { %v450_v41 = vsel %vm184_vm3, %v872_v40, 0.0 }
 0x402   : > { %451 = vadd.xlane.f32.xlu0 %v450_v41 }
 0x404   : > { %v874_v42 = vpop.eup %873 }
 0x405   : > { %v572_v44 = vsel %vm184_vm3, %v874_v42, 0.0 }
 0x406   : > { %573 = vadd.xlane.f32.xlu1 %v572_v44 }
 0x408   : > { %v876_v46 = vpop.eup %875 }
 0x409   : > { %v575_v47 = vsel %vm184_vm3, %v876_v46, 0.0 }
 0x40a   : > { %576 = vadd.xlane.f32.xlu0 %v575_v47 }
 0x417   : > { %583 = vrot.lane.b32.xlu1 %v945_v1, %s908_s21 }
 0x420   : > { %458 = vrot.lane.b32.xlu0 %v945_v1, %s909_s22 }
 0x47f   : > { %v324_v48 = vpop.xlane.xlu1 %323 }
 0x480   : > { %877 = vrcp.f32 %v324_v48 }
 0x483   : > { %v327_v49 = vpop.xlane.xlu0 %326 }
 0x484   : > { %879 = vrcp.f32 %v327_v49 }
 0x487   : > { %v449_v50 = vpop.xlane.xlu1 %448 }
 0x488   : > { %881 = vrcp.f32 %v449_v50 }
 0x48b   : > { %v452_v51 = vpop.xlane.xlu0 %451 }
 0x48c   : > { %883 = vrcp.f32 %v452_v51 }
 0x48d   : > { %v878_v52 = vpop.eup %877 }
 0x48e   : > { %v330_v55 = vmul.f32 %v878_v52, %v866_v29 }
 0x48f   : > { %v574_v53 = vpop.xlane.xlu1 %573 }
 0x490   : > { %885 = vrcp.f32 %v574_v53 }
 0x491   : > { %v880_v54 = vpop.eup %879 }
 0x492   : > { %v331_v56 = vmul.f32 %v880_v54, %v868_v35 }
 0x493   : > { %v577_v57 = vpop.xlane.xlu0 %576  ;;  %v584_v2 = vpop.permute.xlu1 %583 }
 0x494   : > { %887 = vrcp.f32 %v577_v57  ;;  %v332_v58 = vpack.c.bf16 %v331_v56, %v330_v55 }
 0x495   : > { %v882_v1 = vpop.eup %881 }
 0x496   : > { %790 = vmatmul.mubr.msk.bf16.vlgmr.msra.gmra.mxu0 %vm184_vm3, %v332_v58  ;;  %v455_v61 = vmul.f32 %v882_v1, %v870_v38 }
 0x497   : > { %v459_v59 = vpop.permute.xlu0 %458  ;;  %801 = vmatprep.mubr.msk.bf16.mxu0 %vm898_vm0, %v897_v0 }
 0x498   : > { %800 = vmatpush3.bf16.msra.mxu0 %v459_v59 }
 0x499   : > { %v884_v60 = vpop.eup %883  ;;  %811 = vmatprep.subr.bf16.mxu0 %v897_v0 }
 0x49a   : > { %v456_v62 = vmul.f32 %v884_v60, %v872_v40 }
 0x49c   : > { %v457_v63 = vpack.c.bf16 %v456_v62, %v455_v61 }
 0x49d   : > { %v886_v3 = vpop.eup %885 }
 0x49e   : > { %802 = vmatmul.mubr.msk.bf16.vlgmr.msra.gmra.mxu0 %vm184_vm3, %v457_v63  ;;  %v580_v6 = vmul.f32 %v886_v3, %v874_v42 }
 0x49f   : > { %812 = vmatpush3.bf16.msra.mxu0 %v584_v2  ;;  %813 = vmatprep.mubr.msk.bf16.mxu0 %vm898_vm0, %v897_v0 }
 0x4a1   : > { %v888_v4 = vpop.eup %887 }
 0x4a2   : > { %v581_v7 = vmul.f32 %v888_v4, %v876_v46 }
 0x4a4   : > { %v582_v8 = vpack.c.bf16 %v581_v7, %v580_v6 }
 0x4a6   : > { %814 = vmatmul.mubr.msk.bf16.vlgmr.msra.gmra.mxu0 %vm184_vm3, %v582_v8 }
 0x556   : > { %v373_v9 = vpop.f32.mrf.mxu0 }
 0x558   : > { %v791_v10 = vpop.f32.mrf.mxu0 }
 0x55a   : > { %v376_v11 = vpop.f32.mrf.mxu0 }
 0x55b   : > { %v841_v12 = vpack.i.bf16 %v376_v11, %v373_v9 }
 0x55c   : > { %v792_v13 = vpop.f32.mrf.mxu0 }
 0x55d   : > { %842 = vrot.lane.b32.xlu1 %v841_v12, %s910_s23 }
 0x55e   : > { %v498_v14 = vpop.f32.mrf.mxu0 }
 0x560   : > { %v803_v15 = vpop.f32.mrf.mxu0 }
 0x562   : > { %v501_v16 = vpop.f32.mrf.mxu0 }
 0x563   : > { %v846_v17 = vpack.i.bf16 %v501_v16, %v498_v14 }
 0x564   : > { %v804_v18 = vpop.f32.mrf.mxu0 }
 0x565   : > { %847 = vrot.lane.b32.xlu0 %v846_v17, %s911_s24 }
 0x566   : > { %v623_v0 = vpop.f32.mrf.mxu0 }
 0x568   : > { %v815_v19 = vpop.f32.mrf.mxu0 }
 0x56a   : > { %v626_v20 = vpop.f32.mrf.mxu0 }
 0x56b   : > { %v851_v21 = vpack.i.bf16 %v626_v20, %v623_v0 }
 0x56c   : > { %v816_v22 = vpop.f32.mrf.mxu0 }
 0x56d   : > { %852 = vrot.lane.b32.xlu1 %v851_v21, %s912_s25 }
 0x5cf   : > { %v843_v23 = vpop.permute.xlu1 %842 }
 0x5d0   : > { %v845_v25 = vunpack.i.h.bf16 %v843_v23  ;;  %v844_v5 = vunpack.i.l.bf16 %v843_v23 }
 0x5d2   : > { %v655_v29 = vsel %vm130_vm1, %v990_v45, %v845_v25  ;;  %v654_v30 = vsel %vm130_vm1, %v988_v43, %v844_v5 }
 0x5d7   : > { %v848_v24 = vpop.permute.xlu0 %847 }
 0x5d8   : > { %v850_v26 = vunpack.i.h.bf16 %v848_v24  ;;  %v849_v27 = vunpack.i.l.bf16 %v848_v24 }
 0x5da   : > { %v657_v33 = vsel %vm184_vm3, %v655_v29, %v850_v26  ;;  %v656_v34 = vsel %vm184_vm3, %v654_v30, %v849_v27 }
 0x5df   : > { %v853_v28 = vpop.permute.xlu1 %852 }
 0x5e0   : > { %v855_v31 = vunpack.i.h.bf16 %v853_v28  ;;  %v854_v32 = vunpack.i.l.bf16 %v853_v28 }
 0x5e2   : > { %v660_v35 = vsel %vm658_vm4, %v657_v33, %v855_v31  ;;  %v659_v36 = vsel %vm658_vm4, %v656_v34, %v854_v32 }
 0x5e3   : > { %v752_v37 = vpack.c.bf16 %v660_v35, %v660_v35  ;;  %v751_v38 = vpack.c.bf16 %v659_v36, %v659_v36 }
 0x5e5   : > { %671 = vst.msk [vmem:[%s116_s28 + $0x4] sm:$0xf] %vm669_vm5, %v752_v37  ;;  %670 = vst.msk [vmem:[%s116_s28] sm:$0xf] %vm669_vm5, %v751_v38 }
 0x5e6 PF: > { %s11_s6 = sadd.s32 1, %s895_s6  }
 0x5e7   : > { %p8_p4 = scmp.ge.s32.totalorder %s11_s6, 4  }
 0x5e9   :  { %10 = sbr.rel (!%p8_p4) target bundleno = 1 (0x1), region = 54 }

// kernel: vit_encode_image.18
= control target key start
LH: loop header
LB: loop body
LE: loop exit
PB: predicated region body
PF: predicated region fallthrough
CT: control target
= control target key end

     0   :  { %vm55_vm0 = vcmask 261120   ;;  %vm139_vm1 = vcmask 257024   ;;  %s250_s1 = inlined_call_operand.vmem [shape: bf16[32,32], index: 1, kind: input, shape index: {}]   ;;  %s251_s0 = inlined_call_operand.vmem [shape: bf16[32,32], index: 0, kind: input, shape index: {}]   ;;  %s252_s3 = inlined_call_operand.vmem [shape: bf16[32,32], index: 3, kind: input, shape index: {}]   ;;  %s253_s2 = inlined_call_operand.vmem [shape: f32[1,32], index: 2, kind: input, shape index: {}]   ;;  %s254_s4 = inlined_call_operand.vmem [shape: bf16[32,32], index: 4, kind: output, shape index: {}]  }
   0x1   :  { %v184_v0 = vld [vmem:[%s250_s1 + $0x8] sm:$0xff]   ;;  %v185_v1 = vld [vmem:[%s250_s1] sm:$0xff]  }
   0x2   :  { %176 = vmatprep.subr.bf16.mxu0 %v184_v0  ;;  %v186_v2 = vld [vmem:[%s251_s0] sm:$0xff]   ;;  %v187_v3 = vld [vmem:[%s251_s0 + $0x8] sm:$0xff]  }
   0x3   :  { %177 = vmatpush3.bf16.msra.mxu0 %v184_v0  ;;  %180 = vmatprep.mubr.msk.bf16.mxu0 %vm55_vm0, %v186_v2  ;;  %v171_v4 = vld [vmem:[%s252_s3 + $0x8] sm:$0xff]   ;;  %v148_v5 = vld [vmem:[%s253_s2] ss:$0 sm:$0xff] }
   0x4   :  { %178 = vmatprep.subr.bf16.mxu0 %v185_v1  ;;  %v164_v6 = vld [vmem:[%s252_s3] sm:$0xff]   ;;  %v169_v7 = vunpack.c.l.bf16 %v171_v4  ;;  %v170_v14 = vunpack.c.h.bf16 %v171_v4 }
   0x5   :  { %v165_v10 = vunpack.c.l.bf16 %v164_v6  ;;  %v166_v19 = vunpack.c.h.bf16 %v164_v6 }
   0x7   :  { %179 = vmatpush3.bf16.msra.mxu0 %v185_v1 }
   0xa   :  { %181 = vmatmul.mubr.msk.bf16.vlgmr.msra.gmra.mxu0 %vm55_vm0, %v187_v3 }
  0xca   :  { %v182_v8 = vpop.f32.mrf.mxu0 }
  0xcb   :  { %v105_v9 = vadd.f32 %v182_v8, %v148_v5 }
  0xcc   :  { %v96_v11 = vpop.f32.mrf.mxu0 }
  0xcd   :  { %v121_v12 = vadd.f32 %v169_v7, %v105_v9  ;;  %v97_v13 = vadd.f32 %v148_v5, %v96_v11 }
  0xce   :  { %v183_v15 = vpop.f32.mrf.mxu0 }
  0xcf   :  { %v161_v16 = vpack.c.bf16 %v121_v12, %v121_v12  ;;  %v119_v17 = vadd.f32 %v165_v10, %v97_v13  ;;  %v108_v18 = vadd.f32 %v183_v15, %v148_v5 }
  0xd0   :  { %v99_v20 = vpop.f32.mrf.mxu0 }
  0xd1   :  { %142 = vst.msk [vmem:[%s254_s4 + $0x8] sm:$0xf] %vm139_vm1, %v161_v16  ;;  %v159_v21 = vpack.c.bf16 %v119_v17, %v119_v17  ;;  %v122_v22 = vadd.f32 %v170_v14, %v108_v18  ;;  %v100_v23 = vadd.f32 %v148_v5, %v99_v20 }
  0xd3   :  { %140 = vst.msk [vmem:[%s254_s4] sm:$0xf] %vm139_vm1, %v159_v21  ;;  %v162_v24 = vpack.c.bf16 %v122_v22, %v122_v22  ;;  %v120_v25 = vadd.f32 %v166_v19, %v100_v23 }
  0xd5   :  { %143 = vst.msk [vmem:[%s254_s4 + $0xc] sm:$0xf] %vm139_vm1, %v162_v24  ;;  %v160_v26 = vpack.c.bf16 %v120_v25, %v120_v25 }
  0xd7   :  { %141 = vst.msk [vmem:[%s254_s4 + $0x4] sm:$0xf] %vm139_vm1, %v160_v26 }

// kernel: vit_encode_image.20
= control target key start
LH: loop header
LB: loop body
LE: loop exit
PB: predicated region body
PF: predicated region fallthrough
CT: control target
= control target key end

     0   :  { %vm182_vm0 = vcmask 257024   ;;  %s339_s1 = inlined_call_operand.vmem [shape: bf16[128,32], index: 1, kind: input, shape index: {}]   ;;  %s340_s0 = inlined_call_operand.vmem [shape: bf16[32,128], index: 0, kind: input, shape index: {}]   ;;  %s341_s3 = inlined_call_operand.vmem [shape: bf16[32,32], index: 3, kind: input, shape index: {}]   ;;  %s342_s2 = inlined_call_operand.vmem [shape: f32[1,32], index: 2, kind: input, shape index: {}]   ;;  %s343_s4 = inlined_call_operand.vmem [shape: bf16[32,32], index: 4, kind: output, shape index: {}]  }
   0x1   :  { %v249_v0 = vld [vmem:[%s339_s1 + $0x38] sm:$0xff]   ;;  %v250_v1 = vld [vmem:[%s339_s1 + $0x30] sm:$0xff]   ;;  %v251_v2 = vld [vmem:[%s339_s1 + $0x28] sm:$0xff]  }
   0x2   :  { %229 = vmatprep.subr.bf16.mxu0 %v249_v0  ;;  %v252_v3 = vld [vmem:[%s339_s1 + $0x20] sm:$0xff]   ;;  %v253_v5 = vld [vmem:[%s339_s1 + $0x18] sm:$0xff]   ;;  %v254_v6 = vld [vmem:[%s339_s1 + $0x10] sm:$0xff]  }
   0x3   :  { %230 = vmatpush3.bf16.msra.mxu0 %v249_v0  ;;  %v257_v4 = vld [vmem:[%s340_s0] sm:$0xff]   ;;  %v255_v7 = vld [vmem:[%s339_s1 + $0x8] sm:$0xff]  }
   0x4   :  { %231 = vmatprep.subr.bf16.mxu0 %v250_v1  ;;  %245 = vmatprep.mubr.bf16.mxu0 %v257_v4  ;;  %v256_v8 = vld [vmem:[%s339_s1] sm:$0xff]   ;;  %v258_v9 = vld [vmem:[%s340_s0 + $0x8] sm:$0xff]  }
   0x5   :  { %v218_v10 = vld [vmem:[%s341_s3 + $0x8] sm:$0xff]   ;;  %v191_v11 = vld [vmem:[%s342_s2] ss:$0 sm:$0xff] }
   0x6   :  { %v211_v12 = vld [vmem:[%s341_s3] sm:$0xff]   ;;  %v216_v13 = vunpack.c.l.bf16 %v218_v10  ;;  %v217_v20 = vunpack.c.h.bf16 %v218_v10 }
   0x7   :  { %232 = vmatpush3.bf16.msra.mxu0 %v250_v1  ;;  %v212_v16 = vunpack.c.l.bf16 %v211_v12  ;;  %v213_v25 = vunpack.c.h.bf16 %v211_v12 }
   0x8   :  { %233 = vmatprep.subr.bf16.mxu0 %v251_v2 }
   0xb   :  { %234 = vmatpush3.bf16.msra.mxu0 %v251_v2 }
   0xc   :  { %235 = vmatprep.subr.bf16.mxu0 %v252_v3 }
   0xf   :  { %236 = vmatpush3.bf16.msra.mxu0 %v252_v3 }
  0x10   :  { %237 = vmatprep.subr.bf16.mxu0 %v253_v5 }
  0x13   :  { %238 = vmatpush3.bf16.msra.mxu0 %v253_v5 }
  0x14   :  { %239 = vmatprep.subr.bf16.mxu0 %v254_v6 }
  0x17   :  { %240 = vmatpush3.bf16.msra.mxu0 %v254_v6 }
  0x18   :  { %241 = vmatprep.subr.bf16.mxu0 %v255_v7 }
  0x1b   :  { %242 = vmatpush3.bf16.msra.mxu0 %v255_v7 }
  0x1c   :  { %243 = vmatprep.subr.bf16.mxu0 %v256_v8 }
  0x1f   :  { %244 = vmatpush3.bf16.msra.mxu0 %v256_v8 }
  0x22   :  { %246 = vmatmul.mubr.bf16.vlgmr.msra.gmra.mxu0 %v258_v9 }
  0xe2   :  { %v247_v14 = vpop.f32.mrf.mxu0 }
  0xe3   :  { %v148_v15 = vadd.f32 %v247_v14, %v191_v11 }
  0xe4   :  { %v139_v17 = vpop.f32.mrf.mxu0 }
  0xe5   :  { %v164_v18 = vadd.f32 %v216_v13, %v148_v15  ;;  %v140_v19 = vadd.f32 %v191_v11, %v139_v17 }
  0xe6   :  { %v248_v21 = vpop.f32.mrf.mxu0 }
  0xe7   :  { %v208_v22 = vpack.c.bf16 %v164_v18, %v164_v18  ;;  %v162_v23 = vadd.f32 %v212_v16, %v140_v19  ;;  %v151_v24 = vadd.f32 %v248_v21, %v191_v11 }
  0xe8   :  { %v142_v26 = vpop.f32.mrf.mxu0 }
  0xe9   :  { %185 = vst.msk [vmem:[%s343_s4 + $0x8] sm:$0xf] %vm182_vm0, %v208_v22  ;;  %v206_v27 = vpack.c.bf16 %v162_v23, %v162_v23  ;;  %v165_v28 = vadd.f32 %v217_v20, %v151_v24  ;;  %v143_v29 = vadd.f32 %v191_v11, %v142_v26 }
  0xeb   :  { %183 = vst.msk [vmem:[%s343_s4] sm:$0xf] %vm182_vm0, %v206_v27  ;;  %v209_v30 = vpack.c.bf16 %v165_v28, %v165_v28  ;;  %v163_v31 = vadd.f32 %v213_v25, %v143_v29 }
  0xed   :  { %186 = vst.msk [vmem:[%s343_s4 + $0xc] sm:$0xf] %vm182_vm0, %v209_v30  ;;  %v207_v32 = vpack.c.bf16 %v163_v31, %v163_v31 }
  0xef   :  { %184 = vst.msk [vmem:[%s343_s4 + $0x4] sm:$0xf] %vm182_vm0, %v207_v32 }

// kernel: vit_encode_image.19
= control target key start
LH: loop header
LB: loop body
LE: loop exit
PB: predicated region body
PF: predicated region fallthrough
CT: control target
= control target key end

     0   :  { %vm29_vm0 = vcmask 261120   ;;  %s489_s0 = inlined_call_operand.vmem [shape: bf16[32,32], index: 0, kind: input, shape index: {}]   ;;  %s490_s3 = inlined_call_operand.vmem [shape: bf16[32,128], index: 3, kind: input, shape index: {}]   ;;  %s491_s1 = inlined_call_operand.vmem [shape: f32[1,32], index: 1, kind: input, shape index: {}]   ;;  %s492_s2 = inlined_call_operand.vmem [shape: f32[1,32], index: 2, kind: input, shape index: {}]   ;;  %s493_s4 = inlined_call_operand.vmem [shape: f32[1,128], index: 4, kind: input, shape index: {}]   ;;  %s494_s5 = inlined_call_operand.vmem [shape: bf16[32,128], index: 5, kind: output, shape index: {}]  }
   0x1   :  { %v333_v0 = vld [vmem:[%s489_s0] sm:$0xff]   ;;  %v350_v1 = vld [vmem:[%s489_s0 + $0x8] sm:$0xff]  }
   0x2   :  { %v334_v2 = vunpack.c.l.bf16 %v333_v0  ;;  %v338_v3 = vunpack.c.l.bf16 %v350_v1  ;;  %v335_v4 = vunpack.c.h.bf16 %v333_v0  ;;  %v339_v5 = vunpack.c.h.bf16 %v350_v1  ;;  %v364_v30 = vld [vmem:[%s490_s3 + $0x8] sm:$0xff]   ;;  %v365_v31 = vld [vmem:[%s490_s3] sm:$0xff]  }
   0x3   :  { %356 = vmatprep.subr.bf16.mxu0 %v364_v30  ;;  %v317_v46 = vld [vmem:[%s491_s1] ss:$0 sm:$0xff] }
   0x4   :  { %v30_v6 = vsel %vm29_vm0, %v334_v2, 0.0  ;;  %v36_v7 = vsel %vm29_vm0, %v338_v3, 0.0  ;;  %v33_v8 = vsel %vm29_vm0, %v335_v4, 0.0  ;;  %v39_v9 = vsel %vm29_vm0, %v339_v5, 0.0  ;;  %357 = vmatpush3.bf16.msra.mxu0 %v364_v30  ;;  %v318_v51 = vld [vmem:[%s492_s2] ss:$0 sm:$0xff] }
   0x5   :  { %31 = vadd.xlane.f32.xlu0 %v30_v6  ;;  %37 = vadd.xlane.f32.xlu1 %v36_v7  ;;  %v319_v0 = vld [vmem:[%s493_s4] ss:$0 sm:$0xff] }
   0x6   :  { %358 = vmatprep.subr.bf16.mxu0 %v365_v31 }
   0x8   :  { %359 = vmatpush3.bf16.msra.mxu0 %v365_v31 }
   0x9   :  { %34 = vadd.xlane.f32.xlu0 %v33_v8  ;;  %40 = vadd.xlane.f32.xlu1 %v39_v9 }
  0x8e   :  { %v32_v10 = vpop.xlane.xlu0 %31  ;;  %v38_v11 = vpop.xlane.xlu1 %37 }
  0x8f   :  { %v43_v12 = vmul.f32 0.03125, %v32_v10  ;;  %v45_v13 = vmul.f32 0.03125, %v38_v11 }
  0x91   :  { %v47_v14 = vsub.f32 %v334_v2, %v43_v12  ;;  %v49_v15 = vsub.f32 %v338_v3, %v45_v13 }
  0x92   :  { %v35_v16 = vpop.xlane.xlu0 %34  ;;  %v41_v17 = vpop.xlane.xlu1 %40 }
  0x93   :  { %v44_v18 = vmul.f32 0.03125, %v35_v16  ;;  %v46_v19 = vmul.f32 0.03125, %v41_v17  ;;  %v51_v20 = vmul.f32 %v47_v14, %v47_v14  ;;  %v53_v21 = vmul.f32 %v49_v15, %v49_v15 }
  0x95   :  { %v48_v22 = vsub.f32 %v335_v4, %v44_v18  ;;  %v50_v23 = vsub.f32 %v339_v5, %v46_v19  ;;  %v55_v24 = vsel %vm29_vm0, %v51_v20, 0.0  ;;  %v61_v25 = vsel %vm29_vm0, %v53_v21, 0.0 }
  0x96   :  { %56 = vadd.xlane.f32.xlu0 %v55_v24 }
  0x97   :  { %v52_v26 = vmul.f32 %v48_v22, %v48_v22  ;;  %v54_v27 = vmul.f32 %v50_v23, %v50_v23 }
  0x99   :  { %v58_v28 = vsel %vm29_vm0, %v52_v26, 0.0  ;;  %v64_v29 = vsel %vm29_vm0, %v54_v27, 0.0 }
  0x9a   :  { %62 = vadd.xlane.f32.xlu0 %v61_v25  ;;  %59 = vadd.xlane.f32.xlu1 %v58_v28 }
  0x9e   :  { %65 = vadd.xlane.f32.xlu1 %v64_v29 }
 0x11f   :  { %v57_v32 = vpop.xlane.xlu0 %56 }
 0x120   :  { %v67_v33 = vmul.f32 0.03125, %v57_v32 }
 0x122   :  { %v71_v34 = vadd.f32 1e-05, %v67_v33 }
 0x123   :  { %v60_v35 = vpop.xlane.xlu1 %59  ;;  %v63_v36 = vpop.xlane.xlu0 %62 }
 0x124   :  { %366 = vrsqrt.f32 %v71_v34  ;;  %v68_v37 = vmul.f32 0.03125, %v60_v35  ;;  %v69_v38 = vmul.f32 0.03125, %v63_v36 }
 0x126   :  { %v72_v39 = vadd.f32 1e-05, %v68_v37  ;;  %v73_v40 = vadd.f32 1e-05, %v69_v38 }
 0x127   :  { %v66_v41 = vpop.xlane.xlu1 %65 }
 0x128   :  { %368 = vrsqrt.f32 %v72_v39  ;;  %v70_v42 = vmul.f32 0.03125, %v66_v41 }
 0x129   :  { %370 = vrsqrt.f32 %v73_v40 }
 0x12a   :  { %v74_v43 = vadd.f32 1e-05, %v70_v42 }
 0x12c   :  { %372 = vrsqrt.f32 %v74_v43 }
 0x131   :  { %v367_v44 = vpop.eup %366 }
 0x132   :  { %v79_v45 = vmul.f32 %v367_v44, %v47_v14 }
 0x134   :  { %v90_v50 = vmul.f32 %v317_v46, %v79_v45 }
 0x135   :  { %v369_v47 = vpop.eup %368 }
 0x136   :  { %v371_v48 = vpop.eup %370  ;;  %v80_v49 = vmul.f32 %v369_v47, %v48_v22  ;;  %v101_v55 = vadd.f32 %v318_v51, %v90_v50 }
 0x137   :  { %v81_v52 = vmul.f32 %v371_v48, %v49_v15 }
 0x138   :  { %v91_v53 = vmul.f32 %v317_v46, %v80_v49 }
 0x139   :  { %v373_v54 = vpop.eup %372  ;;  %v92_v58 = vmul.f32 %v317_v46, %v81_v52 }
 0x13a   :  { %v102_v56 = vadd.f32 %v318_v51, %v91_v53  ;;  %v82_v57 = vmul.f32 %v373_v54, %v50_v23 }
 0x13b   :  { %v103_v61 = vadd.f32 %v318_v51, %v92_v58 }
 0x13c   :  { %v105_v59 = vpack.c.bf16 %v102_v56, %v101_v55  ;;  %v93_v60 = vmul.f32 %v317_v46, %v82_v57 }
 0x13e   :  { %360 = vmatprep.mubr.msk.bf16.mxu0 %vm29_vm0, %v105_v59  ;;  %v104_v62 = vadd.f32 %v318_v51, %v93_v60 }
 0x140   :  { %v106_v63 = vpack.c.bf16 %v104_v62, %v103_v61 }
 0x142   :  { %361 = vmatmul.mubr.msk.bf16.vlgmr.msra.gmra.mxu0 %vm29_vm0, %v106_v63 }
 0x202   :  { %v362_v1 = vpop.f32.mrf.mxu0 }
 0x203   :  { %v451_v2 = vadd.f32 %v362_v1, %v319_v0 }
 0x204   :  { %v170_v3 = vpop.f32.mrf.mxu0 }
 0x205   :  { %v454_v4 = vmul.f32 0.70710677, %v451_v2  ;;  %v456_v5 = vadd.f32 %v319_v0, %v170_v3 }
 0x206   :  { %v363_v6 = vpop.f32.mrf.mxu0 }
 0x207   :  { %v195_v7 = vand.u32 2147483647, %v454_v4  ;;  %v460_v8 = vmul.f32 0.70710677, %v456_v5  ;;  %v462_v9 = vadd.f32 %v363_v6, %v319_v0  ;;  %vm275_vm1 = vcmp.ge.f32.partialorder %v454_v4, 0.0 }
 0x208   :  { %v173_v10 = vpop.f32.mrf.mxu0 }
 0x209   :  { %v199_v11 = vmul.f32 0.3275911, %v195_v7  ;;  %v193_v12 = vand.u32 2147483647, %v460_v8  ;;  %v466_v13 = vmul.f32 0.70710677, %v462_v9  ;;  %v468_v14 = vadd.f32 %v319_v0, %v173_v10 }
 0x20a   :  { %v251_v25 = vsub.f32 0.0, %v195_v7  ;;  %vm273_vm2 = vcmp.ge.f32.partialorder %v460_v8, 0.0  ;;  %v185_v8 = vmul.f32 0.5, %v456_v5 }
 0x20b   :  { %v203_v15 = vadd.f32 1.0, %v199_v11  ;;  %v197_v16 = vmul.f32 0.3275911, %v193_v12  ;;  %v196_v17 = vand.u32 2147483647, %v466_v13  ;;  %v249_v26 = vsub.f32 0.0, %v193_v12 }
 0x20c   :  { %v472_v18 = vmul.f32 0.70710677, %v468_v14  ;;  %v255_v27 = vmul.f32 %v251_v25, %v195_v7  ;;  %vm276_vm3 = vcmp.ge.f32.partialorder %v466_v13, 0.0 }
 0x20d   :  { %374 = vrcp.f32 %v203_v15  ;;  %v201_v19 = vadd.f32 1.0, %v197_v16  ;;  %v200_v20 = vmul.f32 0.3275911, %v196_v17  ;;  %v252_v28 = vsub.f32 0.0, %v196_v17 }
 0x20e   :  { %v194_v21 = vand.u32 2147483647, %v472_v18  ;;  %v253_v30 = vmul.f32 %v249_v26, %v193_v12  ;;  %v261_v32 = vmul.f32 1.442695, %v255_v27  ;;  %vm274_vm4 = vcmp.ge.f32.partialorder %v472_v18, 0.0 }
 0x20f   :  { %376 = vrcp.f32 %v201_v19  ;;  %v204_v22 = vadd.f32 1.0, %v200_v20  ;;  %v256_v34 = vmul.f32 %v252_v28, %v196_v17 }
 0x210   :  { %v198_v23 = vmul.f32 0.3275911, %v194_v21  ;;  %v250_v33 = vsub.f32 0.0, %v194_v21  ;;  %v257_v38 = vmul.f32 1.442695, %v253_v30 }
 0x211   :  { %378 = vrcp.f32 %v204_v22  ;;  %v263_v44 = vmul.f32 1.442695, %v256_v34 }
 0x212   :  { %v202_v24 = vadd.f32 1.0, %v198_v23  ;;  %v254_v41 = vmul.f32 %v250_v33, %v194_v21 }
 0x214   :  { %380 = vrcp.f32 %v202_v24  ;;  %v259_v51 = vmul.f32 1.442695, %v254_v41  ;;  %v188_v41 = vmul.f32 0.5, %v462_v9 }
 0x215   :  { %382 = vpow2.f32 %v261_v32 }
 0x216   :  { %384 = vpow2.f32 %v257_v38 }
 0x217   :  { %386 = vpow2.f32 %v263_v44 }
 0x218   :  { %388 = vpow2.f32 %v259_v51 }
 0x21a   :  { %v375_v29 = vpop.eup %374 }
 0x21b   :  { %v215_v31 = vmul.f32 1.0614054, %v375_v29 }
 0x21c   :  { %v377_v35 = vpop.eup %376 }
 0x21d   :  { %v219_v36 = vadd.f32 -1.4531521, %v215_v31  ;;  %v213_v37 = vmul.f32 1.0614054, %v377_v35 }
 0x21e   :  { %v379_v39 = vpop.eup %378 }
 0x21f   :  { %v223_v40 = vmul.f32 %v375_v29, %v219_v36  ;;  %v217_v42 = vadd.f32 -1.4531521, %v213_v37  ;;  %v216_v43 = vmul.f32 1.0614054, %v379_v39 }
 0x221   :  { %v227_v45 = vadd.f32 1.4214138, %v223_v40  ;;  %v381_v46 = vpop.eup %380  ;;  %v221_v47 = vmul.f32 %v377_v35, %v217_v42  ;;  %v220_v48 = vadd.f32 -1.4531521, %v216_v43  ;;  %v187_v40 = vmul.f32 0.5, %v451_v2 }
 0x222   :  { %v214_v50 = vmul.f32 1.0614054, %v381_v46  ;;  %v383_v7 = vpop.eup %382 }
 0x223   :  { %v231_v49 = vmul.f32 %v375_v29, %v227_v45  ;;  %v225_v52 = vadd.f32 1.4214138, %v221_v47  ;;  %v224_v53 = vmul.f32 %v379_v39, %v220_v48  ;;  %v385_v19 = vpop.eup %384  ;;  %v186_v47 = vmul.f32 0.5, %v468_v14 }
 0x224   :  { %v218_v55 = vadd.f32 -1.4531521, %v214_v50  ;;  %v387_v24 = vpop.eup %386 }
 0x225   :  { %v235_v54 = vadd.f32 -0.28449672, %v231_v49  ;;  %v229_v56 = vmul.f32 %v377_v35, %v225_v52  ;;  %v228_v57 = vadd.f32 1.4214138, %v224_v53  ;;  %v389_v30 = vpop.eup %388 }
 0x226   :  { %v222_v59 = vmul.f32 %v381_v46, %v218_v55 }
 0x227   :  { %v239_v58 = vmul.f32 %v375_v29, %v235_v54  ;;  %v233_v60 = vadd.f32 -0.28449672, %v229_v56  ;;  %v232_v61 = vmul.f32 %v379_v39, %v228_v57 }
 0x228   :  { %v226_v63 = vadd.f32 1.4214138, %v222_v59 }
 0x229   :  { %v243_v62 = vadd.f32 0.2548296, %v239_v58  ;;  %v237_v0 = vmul.f32 %v377_v35, %v233_v60  ;;  %v236_v1 = vadd.f32 -0.28449672, %v232_v61 }
 0x22a   :  { %v230_v6 = vmul.f32 %v381_v46, %v226_v63 }
 0x22b   :  { %v247_v3 = vmul.f32 %v375_v29, %v243_v62  ;;  %v241_v10 = vadd.f32 0.2548296, %v237_v0  ;;  %v240_v11 = vmul.f32 %v379_v39, %v236_v1 }
 0x22c   :  { %v234_v15 = vadd.f32 -0.28449672, %v230_v6 }
 0x22d   :  { %v267_v12 = vmul.f32 %v383_v7, %v247_v3  ;;  %v245_v16 = vmul.f32 %v377_v35, %v241_v10  ;;  %v244_v17 = vadd.f32 0.2548296, %v240_v11 }
 0x22e   :  { %v238_v21 = vmul.f32 %v381_v46, %v234_v15 }
 0x22f   :  { %v271_v20 = vsub.f32 1.0, %v267_v12  ;;  %v265_v22 = vmul.f32 %v385_v19, %v245_v16  ;;  %v248_v23 = vmul.f32 %v379_v39, %v244_v17 }
 0x230   :  { %v242_v26 = vadd.f32 0.2548296, %v238_v21 }
 0x231   :  { %v279_v25 = vsub.f32 0.0, %v271_v20  ;;  %v269_v27 = vsub.f32 1.0, %v265_v22  ;;  %v268_v28 = vmul.f32 %v387_v24, %v248_v23 }
 0x232   :  { %v246_v29 = vmul.f32 %v381_v46, %v242_v26 }
 0x233   :  { %v283_v31 = vsel %vm275_vm1, %v271_v20, %v279_v25  ;;  %v277_v32 = vsub.f32 0.0, %v269_v27  ;;  %v272_v33 = vsub.f32 1.0, %v268_v28 }
 0x234   :  { %v266_v34 = vmul.f32 %v389_v30, %v246_v29  ;;  %v287_v36 = vadd.f32 1.0, %v283_v31 }
 0x235   :  { %v280_v35 = vsub.f32 0.0, %v272_v33  ;;  %v281_v37 = vsel %vm273_vm2, %v269_v27, %v277_v32 }
 0x236   :  { %v270_v38 = vsub.f32 1.0, %v266_v34  ;;  %v285_v43 = vadd.f32 1.0, %v281_v37  ;;  %v291_v44 = vmul.f32 %v287_v36, %v187_v40 }
 0x237   :  { %v284_v39 = vsel %vm276_vm3, %v272_v33, %v280_v35 }
 0x238   :  { %v288_v4 = vadd.f32 1.0, %v284_v39  ;;  %v278_v42 = vsub.f32 0.0, %v270_v38  ;;  %v289_v49 = vmul.f32 %v285_v43, %v185_v8 }
 0x23a   :  { %v292_v45 = vmul.f32 %v288_v4, %v188_v41  ;;  %v282_v46 = vsel %vm274_vm4, %v270_v38, %v278_v42 }
 0x23b   :  { %v286_v48 = vadd.f32 1.0, %v282_v46 }
 0x23c   :  { %v348_v13 = vpack.c.bf16 %v292_v45, %v291_v44 }
 0x23d   :  { %v290_v50 = vmul.f32 %v286_v48, %v186_v47 }
 0x23e   :  { %351 = vst [vmem:[%s494_s5 + $0x8] sm:$0xff] %v348_v13  }
 0x23f   :  { %v343_v2 = vpack.c.bf16 %v290_v50, %v289_v49 }
 0x241   :  { %344 = vst [vmem:[%s494_s5] sm:$0xff] %v343_v2  }

// kernel: vit_encode_image.27
= control target key start
LH: loop header
LB: loop body
LE: loop exit
PB: predicated region body
PF: predicated region fallthrough
CT: control target
= control target key end

     0   :  { %v142_v1 = vmov 0.0   ;;  %vm143_vm0 = vmmov 0   ;;  %s180_s0 = inlined_call_operand.vmem [shape: bf16[2,32], index: 0, kind: input, shape index: {}]   ;;  %s181_s1 = inlined_call_operand.vmem [shape: bf16[32,16], index: 1, kind: input, shape index: {}]   ;;  %s182_s2 = inlined_call_operand.vmem [shape: f32[1,16], index: 2, kind: input, shape index: {}]   ;;  %s183_s3 = inlined_call_operand.hbm [shape: f32[2,16], index: 3, kind: output, shape index: {}]  }
   0x1   :  { %v118_v0 = vld [vmem:[%s181_s1 + $0x8] sm:$0xff]   ;;  %107 = vmatprep.subr.bf16.mxu0 %v142_v1  ;;  %v119_v2 = vld [vmem:[%s181_s1] sm:$0xff]   ;;  %111 = vmatprep.mubr.msk.bf16.mxu0 %vm143_vm0, %v142_v1 }
   0x2   :  { %108 = vmatpush3.bf16.msra.mxu0 %v118_v0 }
   0x3   :  { %109 = vmatprep.subr.bf16.mxu0 %v142_v1 }
   0x4   :  { %8 = vsyncpa [#allocation3], 0  ;;  %v16_v3 = vld [vmem:[%s180_s0] sm:$0x1]  ;;  %vm40_vm1 = vcmask 261120   ;;  %s144_s20 = smov [#allocation2]  }
   0x5   :  { %v100_v4 = vld [vmem:[%s182_s2] ss:$0 sm:$0xff]  ;;  %s92_s21 = sshll.u32 %s144_s20, 4  ;;  %vm84_vm2 = vcmask 123904   ;;  %s93_s21 = int_to_ptr.vmem [resolvable:$true] %s92_s21 }
   0x6   :  { %110 = vmatpush3.bf16.msra.mxu0 %v119_v2  ;;  %s120_s1 = scalar_lea.vmem %s93_s21, 32  ;;  %p125_p1 = scmp.lt.s32.totalorder %s93_s21, %s93_s21 }
   0x7   :  { %p121_p0 = scmp.ne.s32.totalorder %s93_s21, %s120_s1  ;;  %p126_p2 = scmp.lt.s32.totalorder %s120_s1, %s120_s1 }
   0x9   :  { %112 = vmatmul.mubr.msk.bf16.vlgmr.msra.gmra.mxu0 %vm40_vm1, %v16_v3  ;;  %p127_p3 = por %p126_p2, %p125_p1 }
   0xb   :  { %p128_p4 = pnand %p127_p3, %p121_p0 }
  0xc9   :  { %v78_v5 = vpop.f32.mrf.mxu0 }
  0xca   :  { %v79_v6 = vadd.f32 %v100_v4, %v78_v5 }
  0xcb   :  { %v113_v7 = vpop.f32.mrf.mxu0 }
  0xcc   :  { %85 = vst.msk [vmem:[#allocation2] sm:$0x3] %vm84_vm2, %v79_v6 }
  0xcd   :  { %v81_v8 = vpop.f32.mrf.mxu0 }
  0xce   :  { %131 = shalt.err (!%p128_p4)
}
  0xcf   :  { %95 = dma.vmem_to_hbm [thread:$0]  %s93_s21, 32, %s183_s3, [#allocation3]   ;;  %v114_v9 = vpop.f32.mrf.mxu0 }
  0xd0   :  { %140 = dma.done.wait [#allocation3], 32  }
  0xd1   :  { %141 = vsyncadd [#allocation3], 4294967264 }
  0xd2   :  { %99 = vsyncpa [#allocation3], 1 }

// kernel: vit_encode_image.26
= control target key start
LH: loop header
LB: loop body
LE: loop exit
PB: predicated region body
PF: predicated region fallthrough
CT: control target
= control target key end

     0   :  { %vm16_vm0 = vcmask 254976   ;;  %vm48_vm1 = vcmask 253952   ;;  %s90_s0 = inlined_call_operand.vmem [shape: bf16[2,32], index: 0, kind: input, shape index: {}]   ;;  %s91_s1 = inlined_call_operand.vmem [shape: f32[1,32], index: 1, kind: input, shape index: {}]   ;;  %s92_s2 = inlined_call_operand.vmem [shape: f32[1,32], index: 2, kind: input, shape index: {}]   ;;  %s93_s3 = inlined_call_operand.vmem [shape: bf16[2,32], index: 3, kind: output, shape index: {}]  }
   0x1   :  { %v14_v0 = vld [vmem:[%s90_s0] sm:$0x1] }
   0x2   :  { %v15_v1 = vunpack.c.l.bf16 %v14_v0  ;;  %v54_v12 = vld [vmem:[%s91_s1] ss:$0 sm:$0xff] }
   0x3   :  { %v55_v14 = vld [vmem:[%s92_s2] ss:$0 sm:$0xff] }
   0x4   :  { %v17_v2 = vsel %vm16_vm0, %v15_v1, 0.0 }
   0x5   :  { %18 = vadd.xlane.f32.xlu0 %v17_v2 }
  0x8e   :  { %v19_v3 = vpop.xlane.xlu0 %18 }
  0x8f   :  { %v21_v4 = vmul.f32 0.03125, %v19_v3 }
  0x91   :  { %v22_v5 = vsub.f32 %v15_v1, %v21_v4 }
  0x93   :  { %v23_v6 = vmul.f32 %v22_v5, %v22_v5 }
  0x95   :  { %v24_v7 = vsel %vm16_vm0, %v23_v6, 0.0 }
  0x96   :  { %25 = vadd.xlane.f32.xlu0 %v24_v7 }
 0x11f   :  { %v26_v8 = vpop.xlane.xlu0 %25 }
 0x120   :  { %v27_v9 = vmul.f32 0.03125, %v26_v8 }
 0x122   :  { %v28_v10 = vadd.f32 1e-05, %v27_v9 }
 0x124   :  { %56 = vrsqrt.f32 %v28_v10 }
 0x131   :  { %v57_v11 = vpop.eup %56 }
 0x132   :  { %v30_v13 = vmul.f32 %v57_v11, %v22_v5 }
 0x134   :  { %v38_v15 = vmul.f32 %v54_v12, %v30_v13 }
 0x136   :  { %v46_v16 = vadd.f32 %v55_v14, %v38_v15 }
 0x138   :  { %v47_v17 = vpack.c.bf16 %v46_v16, %v46_v16 }
 0x13a   :  { %49 = vst.msk [vmem:[%s93_s3] sm:$0x1] %vm48_vm1, %v47_v17 }

</bundles_post_ra>
